<compile_context>
chip_gen: v6e
topology: v6e:2x2x1
jax: 0.10.0
libtpu: 0.0.40
codegen_flags: <defaults>
</compile_context>

<pallas_src>
import jax
import jax.numpy as jnp
from jax.experimental import pallas as pl
from jax.experimental.pallas import tpu as pltpu

# Lane-padded channel widths.
_C1, _C2, _C3, _C4, _C5 = 128, 128, 256, 256, 128
_FC = 256
_NC_PAD = 128  # fc3 output padded to a full lane width


# ----------------------------------------------------------------------------
# Fused kernel: entire forward pass for TB samples, activations stay in VMEM
# ----------------------------------------------------------------------------
def _fused_alexnet_kernel(
    patch_ref,     # (L1, TB, K1P) f32 : conv1 im2col patches for this TB block
    w1_ref,        # (K1P, C1)          bf16
    w2_ref,        # (3*C1, C2)         bf16  (3 conv taps pre-concatenated)
    w3_ref,        # (3*C2, C3)         bf16
    w4_ref,        # (3*C3, C4)         bf16
    w5_ref,        # (3*C4, C5)         bf16
    fc1w_ref,      # (2*C5, FC)         bf16  (avgpool taps fused into one K)
    fc1b_ref,      # (1, FC)            f32
    fc2w_ref,      # (FC, FC)           bf16
    fc2b_ref,      # (1, FC)            f32
    fc3w_ref,      # (FC, NC_PAD)       bf16
    fc3b_ref,      # (1, NC_PAD)        f32
    out_ref,       # (TB, NC_PAD)       f32
):
    f32 = jnp.float32
    bf16 = jnp.bfloat16
    L1, TB, K1P = patch_ref.shape

    def mm(a_bf16, w_ref):
        # bf16 MXU matmul, f32 accumulation.
        return jnp.dot(a_bf16, w_ref[...], preferred_element_type=f32)

    def conv3_relu(h, w_ref):
        # 'same' conv (K=3, stride=1, pad=1) + ReLU as ONE MXU contraction.
        # h: (L, TB, Cin) f32  ->  (L, TB, Cout) f32.
        L, tb, cin = h.shape
        cout = w_ref.shape[1]
        z = jnp.zeros((1, tb, cin), f32)
        hp = jnp.concatenate([z, h, z], axis=0)                     # (L+2, TB, Cin)
        # Three shifted taps, lane-concatenated.  All slices/concats move whole
        # (8,128) tiles (TB % 8 == 0), so no scratch / no sublane shuffles.
        xc = jnp.concatenate([hp[0:L], hp[1:L + 1], hp[2:L + 2]], axis=2)
        lhs = xc.reshape(L * tb, 3 * cin).astype(bf16)              # one cast/layer
        y = jnp.maximum(mm(lhs, w_ref), 0.0)                        # (L*TB, Cout)
        return y.reshape(L, tb, cout)

    def maxpool3s2(h):
        # kernel=3, stride=2, no padding; per-sample along L (axis 0).
        L = h.shape[0]
        Lout = (L - 3) // 2 + 1
        rows = [
            jnp.maximum(
                jnp.maximum(h[2 * j:2 * j + 1], h[2 * j + 1:2 * j + 2]),
                h[2 * j + 2:2 * j + 3])
            for j in range(Lout)
        ]
        return jnp.concatenate(rows, axis=0)                        # (Lout, TB, C)

    # ------------------------------ features --------------------------------
    p = patch_ref[...].reshape(L1 * TB, K1P).astype(bf16)
    h = jnp.maximum(mm(p, w1_ref), 0.0).reshape(L1, TB, _C1)        # conv1 + relu
    h = maxpool3s2(h)                                               # (Lp1, TB, C1)
    h = conv3_relu(h, w2_ref)                                       # (Lp1, TB, C2)
    h = maxpool3s2(h)                                               # (Lp2, TB, C2)
    h = conv3_relu(h, w3_ref)                                       # (Lp2, TB, C3)
    h = conv3_relu(h, w4_ref)                                       # (Lp2, TB, C4)
    h = conv3_relu(h, w5_ref)                                       # (Lp2, TB, C5)
    h = maxpool3s2(h)                                               # (Lp3, TB, C5)

    # --------------- AdaptiveAvgPool1d(2) + flatten (fused) -----------------
    L3 = h.shape[0]
    taps = []
    for i in range(2):
        s = (i * L3) // 2
        e = -(-((i + 1) * L3) // 2)                                 # ceil
        taps.append(jnp.sum(h[s:e], axis=0) * (1.0 / (e - s)))      # (TB, C5)
    flat = jnp.concatenate(taps, axis=1)                            # (TB, 2*C5)

    # ------------------------------ classifier -------------------------------
    # TODO(synk): nn.Dropout omitted (identity in eval mode; no RNG mask).
    z = jnp.maximum(mm(flat.astype(bf16), fc1w_ref) + fc1b_ref[...], 0.0)
    z = jnp.maximum(mm(z.astype(bf16), fc2w_ref) + fc2b_ref[...], 0.0)
    z = mm(z.astype(bf16), fc3w_ref) + fc3b_ref[...]                # (TB, NC_PAD)
    out_ref[...] = z


# ----------------------------------------------------------------------------
# One-time weight prep: transpose / zero-pad / tap-concat / cast to bf16
# ----------------------------------------------------------------------------
def prepare_params(params, num_classes=5):
    bf16 = jnp.bfloat16
    f32 = jnp.float32

    def prep_conv3(w, cin_p, cout_p):
        # torch (Cout, Cin, 3) -> (3*Cin_p, Cout_p) with taps stacked along K.
        cout, cin, K = w.shape
        wt = jnp.transpose(w, (2, 1, 0))                             # (K, Cin, Cout)
        wt = jnp.pad(wt, ((0, 0), (0, cin_p - cin), (0, cout_p - cout)))
        return wt.reshape(K * cin_p, cout_p).astype(bf16)

    w1 = params["conv1"]                                             # (48, Cin, 11)
    cout1, cin1, k1 = w1.shape
    k1p = max(8, -(-(cin1 * k1) // 8) * 8)                           # Cin*K -> x8
    w1m = w1.reshape(cout1, cin1 * k1).T                             # (Cin*K, 48)
    w1m = jnp.pad(w1m, ((0, k1p - cin1 * k1), (0, _C1 - cout1))).astype(bf16)

    # fc1: torch weight (FC, 2*C5) with input index c*2 + l (flatten of (C,L)).
    # The kernel feeds [tap l=0 channels | tap l=1 channels] => row index
    # l*C5 + c, so permute the rows accordingly and fuse into ONE matrix.
    fc1_w = params["fc1_w"]
    fc1_wk = fc1_w.T.reshape(_C5, 2, _FC).transpose(1, 0, 2).reshape(2 * _C5, _FC)

    fc3_w = params["fc3_w"]                                          # (nc, 256)
    return {
        "w1": w1m,
        "w2": prep_conv3(params["conv2"], _C1, _C2),
        "w3": prep_conv3(params["conv3"], _C2, _C3),
        "w4": prep_conv3(params["conv4"], _C3, _C4),
        "w5": prep_conv3(params["conv5"], _C4, _C5),
        "fc1w": fc1_wk.astype(bf16),
        "fc1b": params["fc1_b"].reshape(1, _FC).astype(f32),
        "fc2w": params["fc2_w"].T.astype(bf16),
        "fc2b": params["fc2_b"].reshape(1, _FC).astype(f32),
        "fc3w": jnp.pad(fc3_w.T, ((0, 0), (0, _NC_PAD - num_classes))).astype(bf16),
        "fc3b": jnp.pad(params["fc3_b"],
                        (0, _NC_PAD - num_classes)).reshape(1, _NC_PAD).astype(f32),
    }


# ----------------------------------------------------------------------------
# Forward pass wrapper (single pallas_call, batch-blocked grid)
# ----------------------------------------------------------------------------
def alexnet_forward(pp, x, num_classes=5, batch_block=8):
    """x: (B, Cin, L) float32 (PyTorch NCL). Returns (B, num_classes) float32."""
    B, cin, L = x.shape
    TB = batch_block
    assert TB % 8 == 0, "batch_block must be a multiple of 8 (sublane tile)"
    K1, S1, P1 = 11, 4, 2
    k1p = pp["w1"].shape[0]

    # Pad the batch up to a multiple of TB (sliced back off at the end).
    B_pad = -(-B // TB) * TB
    if B_pad != B:
        x = jnp.pad(x, ((0, B_pad - B), (0, 0), (0, 0)))

    # conv1 im2col — the only out-of-kernel glue (stride-4 taps on the tiny
    # input).  Laid out (L1, B, K1P) so each grid step grabs a TB-slice.
    xp = jnp.pad(x, ((0, 0), (0, 0), (P1, P1)))
    L1 = (L + 2 * P1 - K1) // S1 + 1
    idx = (jnp.arange(L1) * S1)[:, None] + jnp.arange(K1)[None, :]
    patches = xp[:, :, idx]                                          # (Bp, Cin, L1, K1)
    patches = jnp.transpose(patches, (0, 2, 1, 3)).reshape(B_pad, L1, cin * K1)
    patches = jnp.pad(patches, ((0, 0), (0, 0), (0, k1p - cin * K1)))
    patches = jnp.transpose(patches, (1, 0, 2))                      # (L1, Bp, K1P) f32

    Lp1 = (L1 - 3) // 2 + 1          # after maxpool1
    Lp2 = (Lp1 - 3) // 2 + 1         # after maxpool2
    Lp3 = (Lp2 - 3) // 2 + 1         # after maxpool3
    assert Lp3 >= 2, "input length too small for AdaptiveAvgPool1d(2)"

    def fixed(arr):
        # Constant weight/bias: block index never changes across the grid.
        return pl.BlockSpec(arr.shape, lambda g: (0, 0))

    grid_spec = pltpu.PrefetchScalarGridSpec(
        num_scalar_prefetch=0,
        grid=(B_pad // TB,),
        in_specs=[
            pl.BlockSpec((L1, TB, k1p), lambda g: (0, g, 0)),
            fixed(pp["w1"]),
            fixed(pp["w2"]), fixed(pp["w3"]), fixed(pp["w4"]), fixed(pp["w5"]),
            fixed(pp["fc1w"]), fixed(pp["fc1b"]),
            fixed(pp["fc2w"]), fixed(pp["fc2b"]),
            fixed(pp["fc3w"]), fixed(pp["fc3b"]),
        ],
        out_specs=pl.BlockSpec((TB, _NC_PAD), lambda g: (g, 0)),
    )

    out = pl.pallas_call(
        _fused_alexnet_kernel,
        out_shape=jax.ShapeDtypeStruct((B_pad, _NC_PAD), jnp.float32),
        grid_spec=grid_spec,
        compiler_params=pltpu.CompilerParams(
            dimension_semantics=("parallel",)),
    )(patches, pp["w1"], pp["w2"], pp["w3"], pp["w4"], pp["w5"],
      pp["fc1w"], pp["fc1b"], pp["fc2w"], pp["fc2b"], pp["fc3w"], pp["fc3b"])

    return out[:B, :num_classes]


# ----------------------------------------------------------------------------
# Parameter init (matches the PyTorch module's tensor shapes; convs bias-free)
# ----------------------------------------------------------------------------
def init_params(key, in_channels=1, num_classes=5):
    ks = jax.random.split(key, 10)

    def n(k, shape, scale=0.05):
        return scale * jax.random.normal(k, shape, jnp.float32)

    return {
        "conv1": n(ks[0], (48, in_channels, 11)),
        "conv2": n(ks[1], (128, 48, 3)),
        "conv3": n(ks[2], (192, 128, 3)),
        "conv4": n(ks[3], (192, 192, 3)),
        "conv5": n(ks[4], (128, 192, 3)),
        "fc1_w": n(ks[5], (256, 128 * 2)),
        "fc1_b": n(ks[6], (256,)),
        "fc2_w": n(ks[7], (256, 256)),
        "fc2_b": n(ks[8], (256,)),
        "fc3_w": n(ks[9], (num_classes, 256)),
        "fc3_b": jnp.zeros((num_classes,), jnp.float32),
    }


if __name__ == "__main__":
    key = jax.random.PRNGKey(0)
    k_x, k_p = jax.random.split(key)
    B, Cin, L = 16, 1, 128                  # grid = (2,) with TB = 8
    x = jax.random.normal(k_x, (B, Cin, L), jnp.float32)
    params = init_params(k_p, in_channels=Cin, num_classes=5)

    prepped = prepare_params(params, num_classes=5)   # one-time weight prep
    fwd = jax.jit(alexnet_forward, static_argnames=("num_classes", "batch_block"))
    y = fwd(prepped, x)
    jax.block_until_ready(y)
    assert y.shape == (B, 5), y.shape
    assert bool(jnp.all(jnp.isfinite(y)))
    print("KERNEL_OK")
</pallas_src>

<mosaic_0001>
module attributes {stable_mosaic.version = 11 : i64} {
  func.func @_fused_alexnet_kernel(%arg0: i32, %arg1: memref<31x8x16xf32, #tpu.memory_space<vmem>>, %arg2: memref<16x128xbf16, #tpu.memory_space<vmem>>, %arg3: memref<384x128xbf16, #tpu.memory_space<vmem>>, %arg4: memref<384x256xbf16, #tpu.memory_space<vmem>>, %arg5: memref<768x256xbf16, #tpu.memory_space<vmem>>, %arg6: memref<768x128xbf16, #tpu.memory_space<vmem>>, %arg7: memref<256x256xbf16, #tpu.memory_space<vmem>>, %arg8: memref<1x256xf32, #tpu.memory_space<vmem>>, %arg9: memref<256x256xbf16, #tpu.memory_space<vmem>>, %arg10: memref<1x256xf32, #tpu.memory_space<vmem>>, %arg11: memref<256x128xbf16, #tpu.memory_space<vmem>>, %arg12: memref<1x128xf32, #tpu.memory_space<vmem>>, %arg13: memref<8x128xf32, #tpu.memory_space<vmem>>) attributes {dimension_semantics = [#tpu.dimension_semantics<parallel>], iteration_bounds = array<i64: 2>, scalar_prefetch = 0 : i64, scratch_operands = 0 : i64, tpu.core_type = #tpu.core_type<tc>, window_params = [{transform_indices = @transform_0, window_bounds = array<i64: 31, 8, 16>}, {pipeline_mode = #tpu.pipeline_mode<synchronous>, transform_indices = @transform_1, window_bounds = array<i64: 16, 128>}, {pipeline_mode = #tpu.pipeline_mode<synchronous>, transform_indices = @transform_2, window_bounds = array<i64: 384, 128>}, {pipeline_mode = #tpu.pipeline_mode<synchronous>, transform_indices = @transform_3, window_bounds = array<i64: 384, 256>}, {pipeline_mode = #tpu.pipeline_mode<synchronous>, transform_indices = @transform_4, window_bounds = array<i64: 768, 256>}, {pipeline_mode = #tpu.pipeline_mode<synchronous>, transform_indices = @transform_5, window_bounds = array<i64: 768, 128>}, {pipeline_mode = #tpu.pipeline_mode<synchronous>, transform_indices = @transform_6, window_bounds = array<i64: 256, 256>}, {pipeline_mode = #tpu.pipeline_mode<synchronous>, transform_indices = @transform_7, window_bounds = array<i64: 1, 256>}, {pipeline_mode = #tpu.pipeline_mode<synchronous>, transform_indices = @transform_8, window_bounds = array<i64: 256, 256>}, {pipeline_mode = #tpu.pipeline_mode<synchronous>, transform_indices = @transform_9, window_bounds = array<i64: 1, 256>}, {pipeline_mode = #tpu.pipeline_mode<synchronous>, transform_indices = @transform_10, window_bounds = array<i64: 256, 128>}, {pipeline_mode = #tpu.pipeline_mode<synchronous>, transform_indices = @transform_11, window_bounds = array<i64: 1, 128>}, {transform_indices = @transform_12, window_bounds = array<i64: 8, 128>}]} {
    %c0 = arith.constant 0 : index
    %c0_0 = arith.constant 0 : index
    %c0_1 = arith.constant 0 : index
    %0 = vector.load %arg1[%c0, %c0_0, %c0_1] : memref<31x8x16xf32, #tpu.memory_space<vmem>>, vector<31x8x16xf32>
    %1 = vector.shape_cast %0 : vector<31x8x16xf32> to vector<248x16xf32>
    %2 = arith.truncf %1 : vector<248x16xf32> to vector<248x16xbf16>
    %c0_2 = arith.constant 0 : index
    %c0_3 = arith.constant 0 : index
    %3 = vector.load %arg2[%c0_2, %c0_3] : memref<16x128xbf16, #tpu.memory_space<vmem>>, vector<16x128xbf16>
    %cst = arith.constant dense<0.000000e+00> : vector<248x128xf32>
    %4 = tpu.matmul %2, %3, %cst {dimension_numbers = #tpu.dot_dimension_numbers<[1], [0], [0], [1], [0, 0, 1, 1], [], []>} : vector<248x16xbf16>, vector<16x128xbf16>, vector<248x128xf32> -> vector<248x128xf32>
    %cst_4 = arith.constant 0.000000e+00 : f32
    %5 = vector.broadcast %cst_4 : f32 to vector<248x128xf32>
    %6 = arith.maximumf %4, %5 : vector<248x128xf32>
    %7 = vector.shape_cast %6 : vector<248x128xf32> to vector<31x8x128xf32>
    %8 = vector.extract_strided_slice %7 {offsets = [0, 0, 0], sizes = [1, 8, 128], strides = [1, 1, 1]} : vector<31x8x128xf32> to vector<1x8x128xf32>
    %9 = vector.extract_strided_slice %7 {offsets = [1, 0, 0], sizes = [1, 8, 128], strides = [1, 1, 1]} : vector<31x8x128xf32> to vector<1x8x128xf32>
    %10 = arith.maximumf %8, %9 : vector<1x8x128xf32>
    %11 = vector.extract_strided_slice %7 {offsets = [2, 0, 0], sizes = [1, 8, 128], strides = [1, 1, 1]} : vector<31x8x128xf32> to vector<1x8x128xf32>
    %12 = arith.maximumf %10, %11 : vector<1x8x128xf32>
    %13 = vector.extract_strided_slice %7 {offsets = [2, 0, 0], sizes = [1, 8, 128], strides = [1, 1, 1]} : vector<31x8x128xf32> to vector<1x8x128xf32>
    %14 = vector.extract_strided_slice %7 {offsets = [3, 0, 0], sizes = [1, 8, 128], strides = [1, 1, 1]} : vector<31x8x128xf32> to vector<1x8x128xf32>
    %15 = arith.maximumf %13, %14 : vector<1x8x128xf32>
    %16 = vector.extract_strided_slice %7 {offsets = [4, 0, 0], sizes = [1, 8, 128], strides = [1, 1, 1]} : vector<31x8x128xf32> to vector<1x8x128xf32>
    %17 = arith.maximumf %15, %16 : vector<1x8x128xf32>
    %18 = vector.extract_strided_slice %7 {offsets = [4, 0, 0], sizes = [1, 8, 128], strides = [1, 1, 1]} : vector<31x8x128xf32> to vector<1x8x128xf32>
    %19 = vector.extract_strided_slice %7 {offsets = [5, 0, 0], sizes = [1, 8, 128], strides = [1, 1, 1]} : vector<31x8x128xf32> to vector<1x8x128xf32>
    %20 = arith.maximumf %18, %19 : vector<1x8x128xf32>
    %21 = vector.extract_strided_slice %7 {offsets = [6, 0, 0], sizes = [1, 8, 128], strides = [1, 1, 1]} : vector<31x8x128xf32> to vector<1x8x128xf32>
    %22 = arith.maximumf %20, %21 : vector<1x8x128xf32>
    %23 = vector.extract_strided_slice %7 {offsets = [6, 0, 0], sizes = [1, 8, 128], strides = [1, 1, 1]} : vector<31x8x128xf32> to vector<1x8x128xf32>
    %24 = vector.extract_strided_slice %7 {offsets = [7, 0, 0], sizes = [1, 8, 128], strides = [1, 1, 1]} : vector<31x8x128xf32> to vector<1x8x128xf32>
    %25 = arith.maximumf %23, %24 : vector<1x8x128xf32>
    %26 = vector.extract_strided_slice %7 {offsets = [8, 0, 0], sizes = [1, 8, 128], strides = [1, 1, 1]} : vector<31x8x128xf32> to vector<1x8x128xf32>
    %27 = arith.maximumf %25, %26 : vector<1x8x128xf32>
    %28 = vector.extract_strided_slice %7 {offsets = [8, 0, 0], sizes = [1, 8, 128], strides = [1, 1, 1]} : vector<31x8x128xf32> to vector<1x8x128xf32>
    %29 = vector.extract_strided_slice %7 {offsets = [9, 0, 0], sizes = [1, 8, 128], strides = [1, 1, 1]} : vector<31x8x128xf32> to vector<1x8x128xf32>
    %30 = arith.maximumf %28, %29 : vector<1x8x128xf32>
    %31 = vector.extract_strided_slice %7 {offsets = [10, 0, 0], sizes = [1, 8, 128], strides = [1, 1, 1]} : vector<31x8x128xf32> to vector<1x8x128xf32>
    %32 = arith.maximumf %30, %31 : vector<1x8x128xf32>
    %33 = vector.extract_strided_slice %7 {offsets = [10, 0, 0], sizes = [1, 8, 128], strides = [1, 1, 1]} : vector<31x8x128xf32> to vector<1x8x128xf32>
    %34 = vector.extract_strided_slice %7 {offsets = [11, 0, 0], sizes = [1, 8, 128], strides = [1, 1, 1]} : vector<31x8x128xf32> to vector<1x8x128xf32>
    %35 = arith.maximumf %33, %34 : vector<1x8x128xf32>
    %36 = vector.extract_strided_slice %7 {offsets = [12, 0, 0], sizes = [1, 8, 128], strides = [1, 1, 1]} : vector<31x8x128xf32> to vector<1x8x128xf32>
    %37 = arith.maximumf %35, %36 : vector<1x8x128xf32>
    %38 = vector.extract_strided_slice %7 {offsets = [12, 0, 0], sizes = [1, 8, 128], strides = [1, 1, 1]} : vector<31x8x128xf32> to vector<1x8x128xf32>
    %39 = vector.extract_strided_slice %7 {offsets = [13, 0, 0], sizes = [1, 8, 128], strides = [1, 1, 1]} : vector<31x8x128xf32> to vector<1x8x128xf32>
    %40 = arith.maximumf %38, %39 : vector<1x8x128xf32>
    %41 = vector.extract_strided_slice %7 {offsets = [14, 0, 0], sizes = [1, 8, 128], strides = [1, 1, 1]} : vector<31x8x128xf32> to vector<1x8x128xf32>
    %42 = arith.maximumf %40, %41 : vector<1x8x128xf32>
    %43 = vector.extract_strided_slice %7 {offsets = [14, 0, 0], sizes = [1, 8, 128], strides = [1, 1, 1]} : vector<31x8x128xf32> to vector<1x8x128xf32>
    %44 = vector.extract_strided_slice %7 {offsets = [15, 0, 0], sizes = [1, 8, 128], strides = [1, 1, 1]} : vector<31x8x128xf32> to vector<1x8x128xf32>
    %45 = arith.maximumf %43, %44 : vector<1x8x128xf32>
    %46 = vector.extract_strided_slice %7 {offsets = [16, 0, 0], sizes = [1, 8, 128], strides = [1, 1, 1]} : vector<31x8x128xf32> to vector<1x8x128xf32>
    %47 = arith.maximumf %45, %46 : vector<1x8x128xf32>
    %48 = vector.extract_strided_slice %7 {offsets = [16, 0, 0], sizes = [1, 8, 128], strides = [1, 1, 1]} : vector<31x8x128xf32> to vector<1x8x128xf32>
    %49 = vector.extract_strided_slice %7 {offsets = [17, 0, 0], sizes = [1, 8, 128], strides = [1, 1, 1]} : vector<31x8x128xf32> to vector<1x8x128xf32>
    %50 = arith.maximumf %48, %49 : vector<1x8x128xf32>
    %51 = vector.extract_strided_slice %7 {offsets = [18, 0, 0], sizes = [1, 8, 128], strides = [1, 1, 1]} : vector<31x8x128xf32> to vector<1x8x128xf32>
    %52 = arith.maximumf %50, %51 : vector<1x8x128xf32>
    %53 = vector.extract_strided_slice %7 {offsets = [18, 0, 0], sizes = [1, 8, 128], strides = [1, 1, 1]} : vector<31x8x128xf32> to vector<1x8x128xf32>
    %54 = vector.extract_strided_slice %7 {offsets = [19, 0, 0], sizes = [1, 8, 128], strides = [1, 1, 1]} : vector<31x8x128xf32> to vector<1x8x128xf32>
    %55 = arith.maximumf %53, %54 : vector<1x8x128xf32>
    %56 = vector.extract_strided_slice %7 {offsets = [20, 0, 0], sizes = [1, 8, 128], strides = [1, 1, 1]} : vector<31x8x128xf32> to vector<1x8x128xf32>
    %57 = arith.maximumf %55, %56 : vector<1x8x128xf32>
    %58 = vector.extract_strided_slice %7 {offsets = [20, 0, 0], sizes = [1, 8, 128], strides = [1, 1, 1]} : vector<31x8x128xf32> to vector<1x8x128xf32>
    %59 = vector.extract_strided_slice %7 {offsets = [21, 0, 0], sizes = [1, 8, 128], strides = [1, 1, 1]} : vector<31x8x128xf32> to vector<1x8x128xf32>
    %60 = arith.maximumf %58, %59 : vector<1x8x128xf32>
    %61 = vector.extract_strided_slice %7 {offsets = [22, 0, 0], sizes = [1, 8, 128], strides = [1, 1, 1]} : vector<31x8x128xf32> to vector<1x8x128xf32>
    %62 = arith.maximumf %60, %61 : vector<1x8x128xf32>
    %63 = vector.extract_strided_slice %7 {offsets = [22, 0, 0], sizes = [1, 8, 128], strides = [1, 1, 1]} : vector<31x8x128xf32> to vector<1x8x128xf32>
    %64 = vector.extract_strided_slice %7 {offsets = [23, 0, 0], sizes = [1, 8, 128], strides = [1, 1, 1]} : vector<31x8x128xf32> to vector<1x8x128xf32>
    %65 = arith.maximumf %63, %64 : vector<1x8x128xf32>
    %66 = vector.extract_strided_slice %7 {offsets = [24, 0, 0], sizes = [1, 8, 128], strides = [1, 1, 1]} : vector<31x8x128xf32> to vector<1x8x128xf32>
    %67 = arith.maximumf %65, %66 : vector<1x8x128xf32>
    %68 = vector.extract_strided_slice %7 {offsets = [24, 0, 0], sizes = [1, 8, 128], strides = [1, 1, 1]} : vector<31x8x128xf32> to vector<1x8x128xf32>
    %69 = vector.extract_strided_slice %7 {offsets = [25, 0, 0], sizes = [1, 8, 128], strides = [1, 1, 1]} : vector<31x8x128xf32> to vector<1x8x128xf32>
    %70 = arith.maximumf %68, %69 : vector<1x8x128xf32>
    %71 = vector.extract_strided_slice %7 {offsets = [26, 0, 0], sizes = [1, 8, 128], strides = [1, 1, 1]} : vector<31x8x128xf32> to vector<1x8x128xf32>
    %72 = arith.maximumf %70, %71 : vector<1x8x128xf32>
    %73 = vector.extract_strided_slice %7 {offsets = [26, 0, 0], sizes = [1, 8, 128], strides = [1, 1, 1]} : vector<31x8x128xf32> to vector<1x8x128xf32>
    %74 = vector.extract_strided_slice %7 {offsets = [27, 0, 0], sizes = [1, 8, 128], strides = [1, 1, 1]} : vector<31x8x128xf32> to vector<1x8x128xf32>
    %75 = arith.maximumf %73, %74 : vector<1x8x128xf32>
    %76 = vector.extract_strided_slice %7 {offsets = [28, 0, 0], sizes = [1, 8, 128], strides = [1, 1, 1]} : vector<31x8x128xf32> to vector<1x8x128xf32>
    %77 = arith.maximumf %75, %76 : vector<1x8x128xf32>
    %78 = vector.extract_strided_slice %7 {offsets = [28, 0, 0], sizes = [1, 8, 128], strides = [1, 1, 1]} : vector<31x8x128xf32> to vector<1x8x128xf32>
    %79 = vector.extract_strided_slice %7 {offsets = [29, 0, 0], sizes = [1, 8, 128], strides = [1, 1, 1]} : vector<31x8x128xf32> to vector<1x8x128xf32>
    %80 = arith.maximumf %78, %79 : vector<1x8x128xf32>
    %81 = vector.extract_strided_slice %7 {offsets = [30, 0, 0], sizes = [1, 8, 128], strides = [1, 1, 1]} : vector<31x8x128xf32> to vector<1x8x128xf32>
    %82 = arith.maximumf %80, %81 : vector<1x8x128xf32>
    %83 = tpu.concatenate %12, %17, %22, %27, %32, %37, %42, %47, %52, %57, %62, %67, %72, %77, %82 in 0 : vector<1x8x128xf32>, vector<1x8x128xf32>, vector<1x8x128xf32>, vector<1x8x128xf32>, vector<1x8x128xf32>, vector<1x8x128xf32>, vector<1x8x128xf32>, vector<1x8x128xf32>, vector<1x8x128xf32>, vector<1x8x128xf32>, vector<1x8x128xf32>, vector<1x8x128xf32>, vector<1x8x128xf32>, vector<1x8x128xf32>, vector<1x8x128xf32> -> vector<15x8x128xf32>
    %cst_5 = arith.constant 0.000000e+00 : f32
    %84 = vector.broadcast %cst_5 : f32 to vector<1x8x128xf32>
    %85 = tpu.concatenate %84, %83, %84 in 0 : vector<1x8x128xf32>, vector<15x8x128xf32>, vector<1x8x128xf32> -> vector<17x8x128xf32>
    %86 = vector.extract_strided_slice %85 {offsets = [0, 0, 0], sizes = [15, 8, 128], strides = [1, 1, 1]} : vector<17x8x128xf32> to vector<15x8x128xf32>
    %87 = vector.extract_strided_slice %85 {offsets = [1, 0, 0], sizes = [15, 8, 128], strides = [1, 1, 1]} : vector<17x8x128xf32> to vector<15x8x128xf32>
    %88 = vector.extract_strided_slice %85 {offsets = [2, 0, 0], sizes = [15, 8, 128], strides = [1, 1, 1]} : vector<17x8x128xf32> to vector<15x8x128xf32>
    %89 = tpu.concatenate %86, %87, %88 in 2 : vector<15x8x128xf32>, vector<15x8x128xf32>, vector<15x8x128xf32> -> vector<15x8x384xf32>
    %90 = vector.shape_cast %89 : vector<15x8x384xf32> to vector<120x384xf32>
    %91 = arith.truncf %90 : vector<120x384xf32> to vector<120x384xbf16>
    %c0_6 = arith.constant 0 : index
    %c0_7 = arith.constant 0 : index
    %92 = vector.load %arg3[%c0_6, %c0_7] : memref<384x128xbf16, #tpu.memory_space<vmem>>, vector<384x128xbf16>
    %cst_8 = arith.constant dense<0.000000e+00> : vector<120x128xf32>
    %93 = tpu.matmul %91, %92, %cst_8 {dimension_numbers = #tpu.dot_dimension_numbers<[1], [0], [0], [1], [0, 0, 1, 1], [], []>} : vector<120x384xbf16>, vector<384x128xbf16>, vector<120x128xf32> -> vector<120x128xf32>
    %cst_9 = arith.constant 0.000000e+00 : f32
    %94 = vector.broadcast %cst_9 : f32 to vector<120x128xf32>
    %95 = arith.maximumf %93, %94 : vector<120x128xf32>
    %96 = vector.shape_cast %95 : vector<120x128xf32> to vector<15x8x128xf32>
    %97 = vector.extract_strided_slice %96 {offsets = [0, 0, 0], sizes = [1, 8, 128], strides = [1, 1, 1]} : vector<15x8x128xf32> to vector<1x8x128xf32>
    %98 = vector.extract_strided_slice %96 {offsets = [1, 0, 0], sizes = [1, 8, 128], strides = [1, 1, 1]} : vector<15x8x128xf32> to vector<1x8x128xf32>
    %99 = arith.maximumf %97, %98 : vector<1x8x128xf32>
    %100 = vector.extract_strided_slice %96 {offsets = [2, 0, 0], sizes = [1, 8, 128], strides = [1, 1, 1]} : vector<15x8x128xf32> to vector<1x8x128xf32>
    %101 = arith.maximumf %99, %100 : vector<1x8x128xf32>
    %102 = vector.extract_strided_slice %96 {offsets = [2, 0, 0], sizes = [1, 8, 128], strides = [1, 1, 1]} : vector<15x8x128xf32> to vector<1x8x128xf32>
    %103 = vector.extract_strided_slice %96 {offsets = [3, 0, 0], sizes = [1, 8, 128], strides = [1, 1, 1]} : vector<15x8x128xf32> to vector<1x8x128xf32>
    %104 = arith.maximumf %102, %103 : vector<1x8x128xf32>
    %105 = vector.extract_strided_slice %96 {offsets = [4, 0, 0], sizes = [1, 8, 128], strides = [1, 1, 1]} : vector<15x8x128xf32> to vector<1x8x128xf32>
    %106 = arith.maximumf %104, %105 : vector<1x8x128xf32>
    %107 = vector.extract_strided_slice %96 {offsets = [4, 0, 0], sizes = [1, 8, 128], strides = [1, 1, 1]} : vector<15x8x128xf32> to vector<1x8x128xf32>
    %108 = vector.extract_strided_slice %96 {offsets = [5, 0, 0], sizes = [1, 8, 128], strides = [1, 1, 1]} : vector<15x8x128xf32> to vector<1x8x128xf32>
    %109 = arith.maximumf %107, %108 : vector<1x8x128xf32>
    %110 = vector.extract_strided_slice %96 {offsets = [6, 0, 0], sizes = [1, 8, 128], strides = [1, 1, 1]} : vector<15x8x128xf32> to vector<1x8x128xf32>
    %111 = arith.maximumf %109, %110 : vector<1x8x128xf32>
    %112 = vector.extract_strided_slice %96 {offsets = [6, 0, 0], sizes = [1, 8, 128], strides = [1, 1, 1]} : vector<15x8x128xf32> to vector<1x8x128xf32>
    %113 = vector.extract_strided_slice %96 {offsets = [7, 0, 0], sizes = [1, 8, 128], strides = [1, 1, 1]} : vector<15x8x128xf32> to vector<1x8x128xf32>
    %114 = arith.maximumf %112, %113 : vector<1x8x128xf32>
    %115 = vector.extract_strided_slice %96 {offsets = [8, 0, 0], sizes = [1, 8, 128], strides = [1, 1, 1]} : vector<15x8x128xf32> to vector<1x8x128xf32>
    %116 = arith.maximumf %114, %115 : vector<1x8x128xf32>
    %117 = vector.extract_strided_slice %96 {offsets = [8, 0, 0], sizes = [1, 8, 128], strides = [1, 1, 1]} : vector<15x8x128xf32> to vector<1x8x128xf32>
    %118 = vector.extract_strided_slice %96 {offsets = [9, 0, 0], sizes = [1, 8, 128], strides = [1, 1, 1]} : vector<15x8x128xf32> to vector<1x8x128xf32>
    %119 = arith.maximumf %117, %118 : vector<1x8x128xf32>
    %120 = vector.extract_strided_slice %96 {offsets = [10, 0, 0], sizes = [1, 8, 128], strides = [1, 1, 1]} : vector<15x8x128xf32> to vector<1x8x128xf32>
    %121 = arith.maximumf %119, %120 : vector<1x8x128xf32>
    %122 = vector.extract_strided_slice %96 {offsets = [10, 0, 0], sizes = [1, 8, 128], strides = [1, 1, 1]} : vector<15x8x128xf32> to vector<1x8x128xf32>
    %123 = vector.extract_strided_slice %96 {offsets = [11, 0, 0], sizes = [1, 8, 128], strides = [1, 1, 1]} : vector<15x8x128xf32> to vector<1x8x128xf32>
    %124 = arith.maximumf %122, %123 : vector<1x8x128xf32>
    %125 = vector.extract_strided_slice %96 {offsets = [12, 0, 0], sizes = [1, 8, 128], strides = [1, 1, 1]} : vector<15x8x128xf32> to vector<1x8x128xf32>
    %126 = arith.maximumf %124, %125 : vector<1x8x128xf32>
    %127 = vector.extract_strided_slice %96 {offsets = [12, 0, 0], sizes = [1, 8, 128], strides = [1, 1, 1]} : vector<15x8x128xf32> to vector<1x8x128xf32>
    %128 = vector.extract_strided_slice %96 {offsets = [13, 0, 0], sizes = [1, 8, 128], strides = [1, 1, 1]} : vector<15x8x128xf32> to vector<1x8x128xf32>
    %129 = arith.maximumf %127, %128 : vector<1x8x128xf32>
    %130 = vector.extract_strided_slice %96 {offsets = [14, 0, 0], sizes = [1, 8, 128], strides = [1, 1, 1]} : vector<15x8x128xf32> to vector<1x8x128xf32>
    %131 = arith.maximumf %129, %130 : vector<1x8x128xf32>
    %132 = tpu.concatenate %101, %106, %111, %116, %121, %126, %131 in 0 : vector<1x8x128xf32>, vector<1x8x128xf32>, vector<1x8x128xf32>, vector<1x8x128xf32>, vector<1x8x128xf32>, vector<1x8x128xf32>, vector<1x8x128xf32> -> vector<7x8x128xf32>
    %cst_10 = arith.constant 0.000000e+00 : f32
    %133 = vector.broadcast %cst_10 : f32 to vector<1x8x128xf32>
    %134 = tpu.concatenate %133, %132, %133 in 0 : vector<1x8x128xf32>, vector<7x8x128xf32>, vector<1x8x128xf32> -> vector<9x8x128xf32>
    %135 = vector.extract_strided_slice %134 {offsets = [0, 0, 0], sizes = [7, 8, 128], strides = [1, 1, 1]} : vector<9x8x128xf32> to vector<7x8x128xf32>
    %136 = vector.extract_strided_slice %134 {offsets = [1, 0, 0], sizes = [7, 8, 128], strides = [1, 1, 1]} : vector<9x8x128xf32> to vector<7x8x128xf32>
    %137 = vector.extract_strided_slice %134 {offsets = [2, 0, 0], sizes = [7, 8, 128], strides = [1, 1, 1]} : vector<9x8x128xf32> to vector<7x8x128xf32>
    %138 = tpu.concatenate %135, %136, %137 in 2 : vector<7x8x128xf32>, vector<7x8x128xf32>, vector<7x8x128xf32> -> vector<7x8x384xf32>
    %139 = vector.shape_cast %138 : vector<7x8x384xf32> to vector<56x384xf32>
    %140 = arith.truncf %139 : vector<56x384xf32> to vector<56x384xbf16>
    %c0_11 = arith.constant 0 : index
    %c0_12 = arith.constant 0 : index
    %141 = vector.load %arg4[%c0_11, %c0_12] : memref<384x256xbf16, #tpu.memory_space<vmem>>, vector<384x256xbf16>
    %cst_13 = arith.constant dense<0.000000e+00> : vector<56x256xf32>
    %142 = tpu.matmul %140, %141, %cst_13 {dimension_numbers = #tpu.dot_dimension_numbers<[1], [0], [0], [1], [0, 0, 1, 1], [], []>} : vector<56x384xbf16>, vector<384x256xbf16>, vector<56x256xf32> -> vector<56x256xf32>
    %cst_14 = arith.constant 0.000000e+00 : f32
    %143 = vector.broadcast %cst_14 : f32 to vector<56x256xf32>
    %144 = arith.maximumf %142, %143 : vector<56x256xf32>
    %145 = vector.shape_cast %144 : vector<56x256xf32> to vector<7x8x256xf32>
    %cst_15 = arith.constant 0.000000e+00 : f32
    %146 = vector.broadcast %cst_15 : f32 to vector<1x8x256xf32>
    %147 = tpu.concatenate %146, %145, %146 in 0 : vector<1x8x256xf32>, vector<7x8x256xf32>, vector<1x8x256xf32> -> vector<9x8x256xf32>
    %148 = vector.extract_strided_slice %147 {offsets = [0, 0, 0], sizes = [7, 8, 256], strides = [1, 1, 1]} : vector<9x8x256xf32> to vector<7x8x256xf32>
    %149 = vector.extract_strided_slice %147 {offsets = [1, 0, 0], sizes = [7, 8, 256], strides = [1, 1, 1]} : vector<9x8x256xf32> to vector<7x8x256xf32>
    %150 = vector.extract_strided_slice %147 {offsets = [2, 0, 0], sizes = [7, 8, 256], strides = [1, 1, 1]} : vector<9x8x256xf32> to vector<7x8x256xf32>
    %151 = tpu.concatenate %148, %149, %150 in 2 : vector<7x8x256xf32>, vector<7x8x256xf32>, vector<7x8x256xf32> -> vector<7x8x768xf32>
    %152 = vector.shape_cast %151 : vector<7x8x768xf32> to vector<56x768xf32>
    %153 = arith.truncf %152 : vector<56x768xf32> to vector<56x768xbf16>
    %c0_16 = arith.constant 0 : index
    %c0_17 = arith.constant 0 : index
    %154 = vector.load %arg5[%c0_16, %c0_17] : memref<768x256xbf16, #tpu.memory_space<vmem>>, vector<768x256xbf16>
    %cst_18 = arith.constant dense<0.000000e+00> : vector<56x256xf32>
    %155 = tpu.matmul %153, %154, %cst_18 {dimension_numbers = #tpu.dot_dimension_numbers<[1], [0], [0], [1], [0, 0, 1, 1], [], []>} : vector<56x768xbf16>, vector<768x256xbf16>, vector<56x256xf32> -> vector<56x256xf32>
    %cst_19 = arith.constant 0.000000e+00 : f32
    %156 = vector.broadcast %cst_19 : f32 to vector<56x256xf32>
    %157 = arith.maximumf %155, %156 : vector<56x256xf32>
    %158 = vector.shape_cast %157 : vector<56x256xf32> to vector<7x8x256xf32>
    %cst_20 = arith.constant 0.000000e+00 : f32
    %159 = vector.broadcast %cst_20 : f32 to vector<1x8x256xf32>
    %160 = tpu.concatenate %159, %158, %159 in 0 : vector<1x8x256xf32>, vector<7x8x256xf32>, vector<1x8x256xf32> -> vector<9x8x256xf32>
    %161 = vector.extract_strided_slice %160 {offsets = [0, 0, 0], sizes = [7, 8, 256], strides = [1, 1, 1]} : vector<9x8x256xf32> to vector<7x8x256xf32>
    %162 = vector.extract_strided_slice %160 {offsets = [1, 0, 0], sizes = [7, 8, 256], strides = [1, 1, 1]} : vector<9x8x256xf32> to vector<7x8x256xf32>
    %163 = vector.extract_strided_slice %160 {offsets = [2, 0, 0], sizes = [7, 8, 256], strides = [1, 1, 1]} : vector<9x8x256xf32> to vector<7x8x256xf32>
    %164 = tpu.concatenate %161, %162, %163 in 2 : vector<7x8x256xf32>, vector<7x8x256xf32>, vector<7x8x256xf32> -> vector<7x8x768xf32>
    %165 = vector.shape_cast %164 : vector<7x8x768xf32> to vector<56x768xf32>
    %166 = arith.truncf %165 : vector<56x768xf32> to vector<56x768xbf16>
    %c0_21 = arith.constant 0 : index
    %c0_22 = arith.constant 0 : index
    %167 = vector.load %arg6[%c0_21, %c0_22] : memref<768x128xbf16, #tpu.memory_space<vmem>>, vector<768x128xbf16>
    %cst_23 = arith.constant dense<0.000000e+00> : vector<56x128xf32>
    %168 = tpu.matmul %166, %167, %cst_23 {dimension_numbers = #tpu.dot_dimension_numbers<[1], [0], [0], [1], [0, 0, 1, 1], [], []>} : vector<56x768xbf16>, vector<768x128xbf16>, vector<56x128xf32> -> vector<56x128xf32>
    %cst_24 = arith.constant 0.000000e+00 : f32
    %169 = vector.broadcast %cst_24 : f32 to vector<56x128xf32>
    %170 = arith.maximumf %168, %169 : vector<56x128xf32>
    %171 = vector.shape_cast %170 : vector<56x128xf32> to vector<7x8x128xf32>
    %172 = vector.extract_strided_slice %171 {offsets = [0, 0, 0], sizes = [1, 8, 128], strides = [1, 1, 1]} : vector<7x8x128xf32> to vector<1x8x128xf32>
    %173 = vector.extract_strided_slice %171 {offsets = [1, 0, 0], sizes = [1, 8, 128], strides = [1, 1, 1]} : vector<7x8x128xf32> to vector<1x8x128xf32>
    %174 = arith.maximumf %172, %173 : vector<1x8x128xf32>
    %175 = vector.extract_strided_slice %171 {offsets = [2, 0, 0], sizes = [1, 8, 128], strides = [1, 1, 1]} : vector<7x8x128xf32> to vector<1x8x128xf32>
    %176 = arith.maximumf %174, %175 : vector<1x8x128xf32>
    %177 = vector.extract_strided_slice %171 {offsets = [2, 0, 0], sizes = [1, 8, 128], strides = [1, 1, 1]} : vector<7x8x128xf32> to vector<1x8x128xf32>
    %178 = vector.extract_strided_slice %171 {offsets = [3, 0, 0], sizes = [1, 8, 128], strides = [1, 1, 1]} : vector<7x8x128xf32> to vector<1x8x128xf32>
    %179 = arith.maximumf %177, %178 : vector<1x8x128xf32>
    %180 = vector.extract_strided_slice %171 {offsets = [4, 0, 0], sizes = [1, 8, 128], strides = [1, 1, 1]} : vector<7x8x128xf32> to vector<1x8x128xf32>
    %181 = arith.maximumf %179, %180 : vector<1x8x128xf32>
    %182 = vector.extract_strided_slice %171 {offsets = [4, 0, 0], sizes = [1, 8, 128], strides = [1, 1, 1]} : vector<7x8x128xf32> to vector<1x8x128xf32>
    %183 = vector.extract_strided_slice %171 {offsets = [5, 0, 0], sizes = [1, 8, 128], strides = [1, 1, 1]} : vector<7x8x128xf32> to vector<1x8x128xf32>
    %184 = arith.maximumf %182, %183 : vector<1x8x128xf32>
    %185 = vector.extract_strided_slice %171 {offsets = [6, 0, 0], sizes = [1, 8, 128], strides = [1, 1, 1]} : vector<7x8x128xf32> to vector<1x8x128xf32>
    %186 = arith.maximumf %184, %185 : vector<1x8x128xf32>
    %187 = tpu.concatenate %176, %181, %186 in 0 : vector<1x8x128xf32>, vector<1x8x128xf32>, vector<1x8x128xf32> -> vector<3x8x128xf32>
    %188 = vector.extract_strided_slice %187 {offsets = [0, 0, 0], sizes = [2, 8, 128], strides = [1, 1, 1]} : vector<3x8x128xf32> to vector<2x8x128xf32>
    %cst_25 = arith.constant dense<0.000000e+00> : vector<8x128xf32>
    %189 = vector.multi_reduction <add>, %188, %cst_25 [0] : vector<2x8x128xf32> to vector<8x128xf32>
    %cst_26 = arith.constant 5.000000e-01 : f32
    %190 = vector.broadcast %cst_26 : f32 to vector<8x128xf32>
    %191 = arith.mulf %189, %190 : vector<8x128xf32>
    %192 = vector.extract_strided_slice %187 {offsets = [1, 0, 0], sizes = [2, 8, 128], strides = [1, 1, 1]} : vector<3x8x128xf32> to vector<2x8x128xf32>
    %cst_27 = arith.constant dense<0.000000e+00> : vector<8x128xf32>
    %193 = vector.multi_reduction <add>, %192, %cst_27 [0] : vector<2x8x128xf32> to vector<8x128xf32>
    %cst_28 = arith.constant 5.000000e-01 : f32
    %194 = vector.broadcast %cst_28 : f32 to vector<8x128xf32>
    %195 = arith.mulf %193, %194 : vector<8x128xf32>
    %196 = tpu.concatenate %191, %195 in 1 : vector<8x128xf32>, vector<8x128xf32> -> vector<8x256xf32>
    %197 = arith.truncf %196 : vector<8x256xf32> to vector<8x256xbf16>
    %c0_29 = arith.constant 0 : index
    %c0_30 = arith.constant 0 : index
    %198 = vector.load %arg7[%c0_29, %c0_30] : memref<256x256xbf16, #tpu.memory_space<vmem>>, vector<256x256xbf16>
    %cst_31 = arith.constant dense<0.000000e+00> : vector<8x256xf32>
    %199 = tpu.matmul %197, %198, %cst_31 {dimension_numbers = #tpu.dot_dimension_numbers<[1], [0], [0], [1], [0, 0, 1, 1], [], []>} : vector<8x256xbf16>, vector<256x256xbf16>, vector<8x256xf32> -> vector<8x256xf32>
    %c0_32 = arith.constant 0 : index
    %c0_33 = arith.constant 0 : index
    %200 = vector.load %arg8[%c0_32, %c0_33] : memref<1x256xf32, #tpu.memory_space<vmem>>, vector<1x256xf32>
    %201 = vector.broadcast %200 : vector<1x256xf32> to vector<8x256xf32>
    %202 = arith.addf %199, %201 : vector<8x256xf32>
    %cst_34 = arith.constant 0.000000e+00 : f32
    %203 = vector.broadcast %cst_34 : f32 to vector<8x256xf32>
    %204 = arith.maximumf %202, %203 : vector<8x256xf32>
    %205 = arith.truncf %204 : vector<8x256xf32> to vector<8x256xbf16>
    %c0_35 = arith.constant 0 : index
    %c0_36 = arith.constant 0 : index
    %206 = vector.load %arg9[%c0_35, %c0_36] : memref<256x256xbf16, #tpu.memory_space<vmem>>, vector<256x256xbf16>
    %cst_37 = arith.constant dense<0.000000e+00> : vector<8x256xf32>
    %207 = tpu.matmul %205, %206, %cst_37 {dimension_numbers = #tpu.dot_dimension_numbers<[1], [0], [0], [1], [0, 0, 1, 1], [], []>} : vector<8x256xbf16>, vector<256x256xbf16>, vector<8x256xf32> -> vector<8x256xf32>
    %c0_38 = arith.constant 0 : index
    %c0_39 = arith.constant 0 : index
    %208 = vector.load %arg10[%c0_38, %c0_39] : memref<1x256xf32, #tpu.memory_space<vmem>>, vector<1x256xf32>
    %209 = vector.broadcast %208 : vector<1x256xf32> to vector<8x256xf32>
    %210 = arith.addf %207, %209 : vector<8x256xf32>
    %cst_40 = arith.constant 0.000000e+00 : f32
    %211 = vector.broadcast %cst_40 : f32 to vector<8x256xf32>
    %212 = arith.maximumf %210, %211 : vector<8x256xf32>
    %213 = arith.truncf %212 : vector<8x256xf32> to vector<8x256xbf16>
    %c0_41 = arith.constant 0 : index
    %c0_42 = arith.constant 0 : index
    %214 = vector.load %arg11[%c0_41, %c0_42] : memref<256x128xbf16, #tpu.memory_space<vmem>>, vector<256x128xbf16>
    %cst_43 = arith.constant dense<0.000000e+00> : vector<8x128xf32>
    %215 = tpu.matmul %213, %214, %cst_43 {dimension_numbers = #tpu.dot_dimension_numbers<[1], [0], [0], [1], [0, 0, 1, 1], [], []>} : vector<8x256xbf16>, vector<256x128xbf16>, vector<8x128xf32> -> vector<8x128xf32>
    %c0_44 = arith.constant 0 : index
    %c0_45 = arith.constant 0 : index
    %216 = vector.load %arg12[%c0_44, %c0_45] : memref<1x128xf32, #tpu.memory_space<vmem>>, vector<1x128xf32>
    %217 = vector.broadcast %216 : vector<1x128xf32> to vector<8x128xf32>
    %218 = arith.addf %215, %217 : vector<8x128xf32>
    %c0_46 = arith.constant 0 : index
    %c0_47 = arith.constant 0 : index
    %219 = vector.load %arg13[%c0_46, %c0_47] : memref<8x128xf32, #tpu.memory_space<vmem>>, vector<8x128xf32>
    tpu.vector_store %arg13[%c0_46, %c0_47], %218 {strides = array<i32>} : memref<8x128xf32, #tpu.memory_space<vmem>>, vector<8x128xf32>,
    return
  }
  func.func @transform_0(%arg0: i32) -> (i32, i32, i32) {
    %c0_i32 = arith.constant 0 : i32
    %c0_i32_0 = arith.constant 0 : i32
    %c0_i32_1 = arith.constant 0 : i32
    return %c0_i32, %arg0, %c0_i32_0 : i32, i32, i32
  }
  func.func @transform_1(%arg0: i32) -> (i32, i32) {
    %c0_i32 = arith.constant 0 : i32
    %c0_i32_0 = arith.constant 0 : i32
    %c0_i32_1 = arith.constant 0 : i32
    return %c0_i32, %c0_i32_0 : i32, i32
  }
  func.func @transform_2(%arg0: i32) -> (i32, i32) {
    %c0_i32 = arith.constant 0 : i32
    %c0_i32_0 = arith.constant 0 : i32
    %c0_i32_1 = arith.constant 0 : i32
    return %c0_i32, %c0_i32_0 : i32, i32
  }
  func.func @transform_3(%arg0: i32) -> (i32, i32) {
    %c0_i32 = arith.constant 0 : i32
    %c0_i32_0 = arith.constant 0 : i32
    %c0_i32_1 = arith.constant 0 : i32
    return %c0_i32, %c0_i32_0 : i32, i32
  }
  func.func @transform_4(%arg0: i32) -> (i32, i32) {
    %c0_i32 = arith.constant 0 : i32
    %c0_i32_0 = arith.constant 0 : i32
    %c0_i32_1 = arith.constant 0 : i32
    return %c0_i32, %c0_i32_0 : i32, i32
  }
  func.func @transform_5(%arg0: i32) -> (i32, i32) {
    %c0_i32 = arith.constant 0 : i32
    %c0_i32_0 = arith.constant 0 : i32
    %c0_i32_1 = arith.constant 0 : i32
    return %c0_i32, %c0_i32_0 : i32, i32
  }
  func.func @transform_6(%arg0: i32) -> (i32, i32) {
    %c0_i32 = arith.constant 0 : i32
    %c0_i32_0 = arith.constant 0 : i32
    %c0_i32_1 = arith.constant 0 : i32
    return %c0_i32, %c0_i32_0 : i32, i32
  }
  func.func @transform_7(%arg0: i32) -> (i32, i32) {
    %c0_i32 = arith.constant 0 : i32
    %c0_i32_0 = arith.constant 0 : i32
    %c0_i32_1 = arith.constant 0 : i32
    return %c0_i32, %c0_i32_0 : i32, i32
  }
  func.func @transform_8(%arg0: i32) -> (i32, i32) {
    %c0_i32 = arith.constant 0 : i32
    %c0_i32_0 = arith.constant 0 : i32
    %c0_i32_1 = arith.constant 0 : i32
    return %c0_i32, %c0_i32_0 : i32, i32
  }
  func.func @transform_9(%arg0: i32) -> (i32, i32) {
    %c0_i32 = arith.constant 0 : i32
    %c0_i32_0 = arith.constant 0 : i32
    %c0_i32_1 = arith.constant 0 : i32
    return %c0_i32, %c0_i32_0 : i32, i32
  }
  func.func @transform_10(%arg0: i32) -> (i32, i32) {
    %c0_i32 = arith.constant 0 : i32
    %c0_i32_0 = arith.constant 0 : i32
    %c0_i32_1 = arith.constant 0 : i32
    return %c0_i32, %c0_i32_0 : i32, i32
  }
  func.func @transform_11(%arg0: i32) -> (i32, i32) {
    %c0_i32 = arith.constant 0 : i32
    %c0_i32_0 = arith.constant 0 : i32
    %c0_i32_1 = arith.constant 0 : i32
    return %c0_i32, %c0_i32_0 : i32, i32
  }
  func.func @transform_12(%arg0: i32) -> (i32, i32) {
    %c0_i32 = arith.constant 0 : i32
    %c0_i32_0 = arith.constant 0 : i32
    return %arg0, %c0_i32 : i32, i32
  }
}

</mosaic_0001>

<bundles_post_ra>
// kernel: alexnet_forward.1
= control target key start
LH: loop header
LB: loop body
LE: loop exit
PB: predicated region body
PF: predicated region fallthrough
CT: control target
= control target key end

     0   :  { %s5094_s21 = smov 0   ;;  %s5096_s22 = smov 0   ;;  %s6296_s0 = inlined_call_operand.vmem [shape: f32[31,16,16], index: 0, kind: input, shape index: {}]   ;;  %s6297_s1 = inlined_call_operand.vmem [shape: bf16[16,128], index: 1, kind: input, shape index: {}]   ;;  %s6298_s2 = inlined_call_operand.vmem [shape: bf16[384,128], index: 2, kind: input, shape index: {}]   ;;  %s6299_s3 = inlined_call_operand.vmem [shape: bf16[384,256], index: 3, kind: input, shape index: {}]   ;;  %s6300_s4 = inlined_call_operand.vmem [shape: bf16[768,256], index: 4, kind: input, shape index: {}]   ;;  %s6301_s5 = inlined_call_operand.vmem [shape: bf16[768,128], index: 5, kind: input, shape index: {}]   ;;  %s6302_s6 = inlined_call_operand.vmem [shape: bf16[256,256], index: 6, kind: input, shape index: {}]   ;;  %s6303_s7 = inlined_call_operand.vmem [shape: f32[1,256], index: 7, kind: input, shape index: {}]   ;;  %s6304_s8 = inlined_call_operand.vmem [shape: bf16[256,256], index: 8, kind: input, shape index: {}]   ;;  %s6305_s9 = inlined_call_operand.vmem [shape: f32[1,256], index: 9, kind: input, shape index: {}]   ;;  %s6306_s10 = inlined_call_operand.vmem [shape: bf16[256,128], index: 10, kind: input, shape index: {}]   ;;  %s6307_s11 = inlined_call_operand.vmem [shape: f32[1,128], index: 11, kind: input, shape index: {}]   ;;  %s6308_s12 = inlined_call_operand.vmem [shape: f32[16,128], index: 12, kind: output, shape index: {}]  }
   0x1   :  { %s5098_s23 = smov 0  }
   0x2 LB: > { %s3944_s24 = sadd.s32 4294967295, %s5024_s23   ;;  %s5111_s25 = sadd.s32 1, %s5024_s23   ;;  %s5024_s23 = sphi %s5098_s23, %s6311_s23   ;;  %s5020_s22 = sphi %s5096_s22, %s6310_s22   ;;  %s5016_s21 = sphi %s5094_s21, %s6309_s21  }
   0x3   : > { %s26_s26 = ssub.s32 %s5024_s23, %s5111_s25  ;;  %s29_s27 = sadd.s32 1, %s5020_s22 }
   0x4   : > { %p27_p0 = scmp.eq.s32.totalorder %s26_s26, 0  ;;  %p36_p1 = scmp.ne.s32.totalorder %s5020_s22, %s5016_s21 }
   0x5   : > { %p37_p2 = scmp.eq.s32.totalorder %s5024_s23, 0  ;;  %p3947_p4 = scmp.ge.s32.totalorder %s5024_s23, 2 }
   0x6   : > { %s5120_s28 = scalar_select %p27_p0, %s5020_s22, %s29_s27  }
   0x7   : > { %p38_p3 = por %p37_p2, %p36_p1  ;;  %352 = sbr.rel (%p3947_p4) target bundleno = 32 (0x20), region = 60 }
   0xc   : > { %355 = sbr.rel (!%p38_p3) target bundleno = 32 (0x20), region = 64  ;;  %s357_s29 = sand.u32 (%p38_p3), 1, %s5020_s22  }
   0xd   : > { %s3948_s30 = sshll.u32 (%p38_p3), %s5024_s23, 3  ;;  %s4572_s13 = smul.u32 (%p38_p3), 248, %s357_s29 }
   0xe   : > { %s5128_s16 = scalar_lea.vmem (%p38_p3), %s6296_s0, %s3948_s30 }
   0xf   : > { %v450_v0 = vld [vmem:[%s5128_s16] sm:$0xff] (%p38_p3)  ;;  %v452_v1 = vld [vmem:[%s5128_s16 + $0x10] sm:$0xff] (%p38_p3)  ;;  %s5136_s17 = scalar_lea.vmem (%p38_p3), [#allocation2], %s4572_s13 }
  0x10   : > { %v454_v2 = vld [vmem:[%s5128_s16 + $0x20] sm:$0xff] (%p38_p3)  ;;  %v456_v3 = vld [vmem:[%s5128_s16 + $0x30] sm:$0xff] (%p38_p3)  ;;  %451 = vst [vmem:[%s5136_s17] sm:$0xff] (%p38_p3), %v450_v0  ;;  %453 = vst [vmem:[%s5136_s17 + $0x8] sm:$0xff] (%p38_p3), %v452_v1 }
  0x11   : > { %v458_v4 = vld [vmem:[%s5128_s16 + $0x40] sm:$0xff]  ;;  %v460_v5 = vld [vmem:[%s5128_s16 + $0x50] sm:$0xff]  ;;  %455 = vst [vmem:[%s5136_s17 + $0x10] sm:$0xff] %v454_v2  ;;  %457 = vst [vmem:[%s5136_s17 + $0x18] sm:$0xff] %v456_v3 }
  0x12   : > { %459 = vst [vmem:[%s5136_s17 + $0x20] sm:$0xff] %v458_v4  ;;  %461 = vst [vmem:[%s5136_s17 + $0x28] sm:$0xff] %v460_v5  ;;  %v462_v6 = vld [vmem:[%s5128_s16 + $0x60] sm:$0xff]  ;;  %v464_v7 = vld [vmem:[%s5128_s16 + $0x70] sm:$0xff] }
  0x13   : > { %v466_v8 = vld [vmem:[%s5128_s16 + $0x80] sm:$0xff]  ;;  %463 = vst [vmem:[%s5136_s17 + $0x30] sm:$0xff] %v462_v6  ;;  %465 = vst [vmem:[%s5136_s17 + $0x38] sm:$0xff] %v464_v7  ;;  %v468_v9 = vld [vmem:[%s5128_s16 + $0x90] sm:$0xff] }
  0x14   : > { %467 = vst [vmem:[%s5136_s17 + $0x40] sm:$0xff] %v466_v8  ;;  %v470_v10 = vld [vmem:[%s5128_s16 + $0xa0] sm:$0xff]  ;;  %v472_v11 = vld [vmem:[%s5128_s16 + $0xb0] sm:$0xff]  ;;  %469 = vst [vmem:[%s5136_s17 + $0x48] sm:$0xff] %v468_v9 }
  0x15   : > { %471 = vst [vmem:[%s5136_s17 + $0x50] sm:$0xff] %v470_v10  ;;  %473 = vst [vmem:[%s5136_s17 + $0x58] sm:$0xff] %v472_v11  ;;  %v474_v12 = vld [vmem:[%s5128_s16 + $0xc0] sm:$0xff]  ;;  %v476_v13 = vld [vmem:[%s5128_s16 + $0xd0] sm:$0xff] }
  0x16   : > { %v478_v14 = vld [vmem:[%s5128_s16 + $0xe0] sm:$0xff]  ;;  %475 = vst [vmem:[%s5136_s17 + $0x60] sm:$0xff] %v474_v12  ;;  %477 = vst [vmem:[%s5136_s17 + $0x68] sm:$0xff] %v476_v13  ;;  %v480_v15 = vld [vmem:[%s5128_s16 + $0xf0] sm:$0xff] }
  0x17   : > { %479 = vst [vmem:[%s5136_s17 + $0x70] sm:$0xff] %v478_v14  ;;  %v482_v16 = vld [vmem:[%s5128_s16 + $0x100] sm:$0xff]  ;;  %v484_v17 = vld [vmem:[%s5128_s16 + $0x110] sm:$0xff]  ;;  %481 = vst [vmem:[%s5136_s17 + $0x78] sm:$0xff] %v480_v15 }
  0x18   : > { %483 = vst [vmem:[%s5136_s17 + $0x80] sm:$0xff] %v482_v16  ;;  %485 = vst [vmem:[%s5136_s17 + $0x88] sm:$0xff] %v484_v17  ;;  %v486_v18 = vld [vmem:[%s5128_s16 + $0x120] sm:$0xff]  ;;  %v488_v19 = vld [vmem:[%s5128_s16 + $0x130] sm:$0xff] }
  0x19   : > { %v490_v20 = vld [vmem:[%s5128_s16 + $0x140] sm:$0xff]  ;;  %487 = vst [vmem:[%s5136_s17 + $0x90] sm:$0xff] %v486_v18  ;;  %489 = vst [vmem:[%s5136_s17 + $0x98] sm:$0xff] %v488_v19  ;;  %v492_v21 = vld [vmem:[%s5128_s16 + $0x150] sm:$0xff] }
  0x1a   : > { %491 = vst [vmem:[%s5136_s17 + $0xa0] sm:$0xff] %v490_v20  ;;  %v494_v22 = vld [vmem:[%s5128_s16 + $0x160] sm:$0xff]  ;;  %v496_v23 = vld [vmem:[%s5128_s16 + $0x170] sm:$0xff]  ;;  %493 = vst [vmem:[%s5136_s17 + $0xa8] sm:$0xff] %v492_v21 }
  0x1b   : > { %495 = vst [vmem:[%s5136_s17 + $0xb0] sm:$0xff] %v494_v22  ;;  %497 = vst [vmem:[%s5136_s17 + $0xb8] sm:$0xff] %v496_v23  ;;  %v498_v24 = vld [vmem:[%s5128_s16 + $0x180] sm:$0xff]  ;;  %v500_v25 = vld [vmem:[%s5128_s16 + $0x190] sm:$0xff] }
  0x1c   : > { %v502_v26 = vld [vmem:[%s5128_s16 + $0x1a0] sm:$0xff]  ;;  %499 = vst [vmem:[%s5136_s17 + $0xc0] sm:$0xff] %v498_v24  ;;  %501 = vst [vmem:[%s5136_s17 + $0xc8] sm:$0xff] %v500_v25  ;;  %v504_v27 = vld [vmem:[%s5128_s16 + $0x1b0] sm:$0xff] }
  0x1d   : > { %503 = vst [vmem:[%s5136_s17 + $0xd0] sm:$0xff] %v502_v26  ;;  %v506_v28 = vld [vmem:[%s5128_s16 + $0x1c0] sm:$0xff]  ;;  %v508_v29 = vld [vmem:[%s5128_s16 + $0x1d0] sm:$0xff]  ;;  %505 = vst [vmem:[%s5136_s17 + $0xd8] sm:$0xff] %v504_v27 }
  0x1e   : > { %507 = vst [vmem:[%s5136_s17 + $0xe0] sm:$0xff] %v506_v28  ;;  %509 = vst [vmem:[%s5136_s17 + $0xe8] sm:$0xff] %v508_v29  ;;  %v510_v30 = vld [vmem:[%s5128_s16 + $0x1e0] sm:$0xff] }
  0x1f   : > { %511 = vst [vmem:[%s5136_s17 + $0xf0] sm:$0xff] %v510_v30 }
  0x20 PF: > { %p3949_p5 = scmp.ge.s32.totalorder %s5024_s23, 1  ;;  %p516_p6 = scmp.lt.s32.totalorder %s5024_s23, 3 }
  0x22   : > { %p517_p7 = pnand %p3949_p5, %p516_p6 }
  0x23   : > { %s523_s20 = sand.u32 (!%p517_p7), 1, %s5016_s21   ;;  %p563_p8 = scmp.lt.s32.totalorder (!%p517_p7), %s3944_s24, 1 }
  0x24   : > { %520 = sbr.rel (%p517_p7) target bundleno = 1834 (0x72a), region = 102 }
  0x25   : > { %s4573_s26 = smul.u32 (!%p517_p7), 248, %s523_s20 }
  0x27   : > { %s5203_s30 = scalar_lea.vmem (!%p517_p7), [#allocation2], %s4573_s26 }
  0x29   : > { %v4601_v31 = vld [vmem:[%s6297_s1] sm:$0xff]   ;;  %v4602_v32 = vld [vmem:[%s6298_s2 + $0xb8] sm:$0xff]   ;;  %vm623_vm0 = vcmask 130048   ;;  %v570_v35 = vld [vmem:[%s5203_s30 + $0x10] sm:$0xff]  ;;  %s6313_s24 = smov (!%p563_p8, %s3944_s24), 1 }
  0x2a   : > { %4506 = vmatprep.subr.bf16.mxu0 %v4601_v31  ;;  %v568_v33 = vld [vmem:[%s5203_s30] sm:$0xff]  ;;  %v569_v34 = vld [vmem:[%s5203_s30 + $0x8] sm:$0xff]  ;;  %v571_v37 = vld [vmem:[%s5203_s30 + $0x18] sm:$0xff]  ;;  %s3950_s27 = sshll.u32 %s6313_s24, 3 }
  0x2b   : > { %4507 = vmatpush3.bf16.msra.mxu0 %v4601_v31  ;;  %v599_v36 = vpack.c.bf16 %v569_v34, %v568_v33  ;;  %v572_v38 = vld [vmem:[%s5203_s30 + $0x20] sm:$0xff]  ;;  %v573_v39 = vld [vmem:[%s5203_s30 + $0x28] sm:$0xff]  ;;  %v600_v40 = vpack.c.bf16 %v571_v37, %v570_v35  ;;  %v4603_v42 = vld [vmem:[%s6298_s2 + $0xb0] sm:$0xff]   ;;  %s566_s15 = scalar_lea.vmem %s6308_s12, %s3950_s27 }
  0x2c   : > { %4540 = vmatprep.subr.bf16.mxu0 %v4602_v32  ;;  %v601_v41 = vpack.c.bf16 %v573_v39, %v572_v38  ;;  %v574_v43 = vld [vmem:[%s5203_s30 + $0x30] sm:$0xff]  ;;  %v575_v44 = vld [vmem:[%s5203_s30 + $0x38] sm:$0xff]  ;;  %v576_v45 = vld [vmem:[%s5203_s30 + $0x40] sm:$0xff] }
  0x2d   : > { %4508 = vmatprep.mubr.msk.bf16.mxu0 %vm623_vm0, %v599_v36  ;;  %v577_v46 = vld [vmem:[%s5203_s30 + $0x48] sm:$0xff]  ;;  %v602_v47 = vpack.c.bf16 %v575_v44, %v574_v43  ;;  %v4604_v49 = vld [vmem:[%s6298_s2 + $0x78] sm:$0xff]   ;;  %v578_v50 = vld [vmem:[%s5203_s30 + $0x50] sm:$0xff] }
  0x2e   : > { %4509 = vmatmul.mubr.msk.bf16.vlgmr.msra.gmra.mxu0 %vm623_vm0, %v600_v40  ;;  %v603_v48 = vpack.c.bf16 %v577_v46, %v576_v45  ;;  %v579_v51 = vld [vmem:[%s5203_s30 + $0x58] sm:$0xff]  ;;  %v580_v53 = vld [vmem:[%s5203_s30 + $0x60] sm:$0xff]  ;;  %v581_v54 = vld [vmem:[%s5203_s30 + $0x68] sm:$0xff]  ;;  %4284 = vmatprep.subr.bf16.mxu1 %v4604_v49 }
  0x2f   : > { %4512 = vmatprep.mubr.msk.bf16.mxu0 %vm623_vm0, %v601_v41  ;;  %4541 = vmatpush3.bf16.msra.mxu0 %v4602_v32  ;;  %v4605_v52 = vld [vmem:[%s6298_s2 + $0x38] sm:$0xff]   ;;  %v4606_v55 = vld [vmem:[%s6298_s2 + $0x70] sm:$0xff]   ;;  %v4607_v56 = vld [vmem:[%s6298_s2 + $0xa8] sm:$0xff]   ;;  %v604_v59 = vpack.c.bf16 %v579_v51, %v578_v50  ;;  %v605_v61 = vpack.c.bf16 %v581_v54, %v580_v53 }
  0x30   : > { %4542 = vmatprep.subr.bf16.mxu0 %v4603_v42  ;;  %4285 = vmatpush3.bf16.msra.mxu1 %v4605_v52  ;;  %v4608_v57 = vld [vmem:[%s6298_s2 + $0x30] sm:$0xff]   ;;  %v4609_v58 = vld [vmem:[%s6298_s2 + $0x68] sm:$0xff]   ;;  %v4611_v62 = vld [vmem:[%s6298_s2 + $0x60] sm:$0xff]  }
  0x31   : > { %4286 = vmatprep.subr.bf16.mxu1 %v4606_v55  ;;  %v4610_v60 = vld [vmem:[%s6298_s2 + $0x28] sm:$0xff]   ;;  %v4612_v63 = vld [vmem:[%s6298_s2 + $0xa0] sm:$0xff]   ;;  %v583_v1 = vld [vmem:[%s5203_s30 + $0x78] sm:$0xff] }
  0x32   : > { %v582_v0 = vld [vmem:[%s5203_s30 + $0x70] sm:$0xff]  ;;  %v4613_v2 = vld [vmem:[%s6298_s2 + $0x20] sm:$0xff]   ;;  %v587_v8 = vld [vmem:[%s5203_s30 + $0x98] sm:$0xff] }
  0x33   : > { %4543 = vmatpush3.bf16.msra.mxu0 %v4603_v42  ;;  %v584_v3 = vld [vmem:[%s5203_s30 + $0x80] sm:$0xff]  ;;  %v585_v4 = vld [vmem:[%s5203_s30 + $0x88] sm:$0xff]  ;;  %v606_v5 = vpack.c.bf16 %v583_v1, %v582_v0  ;;  %v586_v7 = vld [vmem:[%s5203_s30 + $0x90] sm:$0xff] }
  0x34   : > { %4544 = vmatprep.subr.bf16.mxu0 %v4607_v56  ;;  %4287 = vmatpush3.bf16.msra.mxu1 %v4608_v57  ;;  %v607_v6 = vpack.c.bf16 %v585_v4, %v584_v3  ;;  %v588_v9 = vld [vmem:[%s5203_s30 + $0xa0] sm:$0xff]  ;;  %v589_v10 = vld [vmem:[%s5203_s30 + $0xa8] sm:$0xff]  ;;  %v608_v11 = vpack.c.bf16 %v587_v8, %v586_v7  ;;  %v590_v13 = vld [vmem:[%s5203_s30 + $0xb0] sm:$0xff] }
  0x35   : > { %4288 = vmatprep.subr.bf16.mxu1 %v4609_v58  ;;  %v609_v12 = vpack.c.bf16 %v589_v10, %v588_v9  ;;  %v591_v14 = vld [vmem:[%s5203_s30 + $0xb8] sm:$0xff]  ;;  %v592_v15 = vld [vmem:[%s5203_s30 + $0xc0] sm:$0xff]  ;;  %v593_v16 = vld [vmem:[%s5203_s30 + $0xc8] sm:$0xff] }
  0x36   : > { %4513 = vmatmul.mubr.msk.bf16.gmra.mxu0 %vm623_vm0, %v602_v47  ;;  %v610_v17 = vpack.c.bf16 %v591_v14, %v590_v13  ;;  %v611_v18 = vpack.c.bf16 %v593_v16, %v592_v15  ;;  %v594_v19 = vld [vmem:[%s5203_s30 + $0xd0] sm:$0xff]  ;;  %v595_v20 = vld [vmem:[%s5203_s30 + $0xd8] sm:$0xff]  ;;  %v596_v21 = vld [vmem:[%s5203_s30 + $0xe0] sm:$0xff] }
  0x37   : > { %4516 = vmatprep.mubr.msk.bf16.mxu0 %vm623_vm0, %v603_v48  ;;  %4545 = vmatpush3.bf16.msra.mxu0 %v4607_v56  ;;  %v597_v22 = vld [vmem:[%s5203_s30 + $0xe8] sm:$0xff]  ;;  %v612_v23 = vpack.c.bf16 %v595_v20, %v594_v19  ;;  %v598_v25 = vld [vmem:[%s5203_s30 + $0xf0] sm:$0xff]  ;;  %v4614_v27 = vld [vmem:[%s6298_s2 + $0x58] sm:$0xff]  }
  0x38   : > { %4546 = vmatprep.subr.bf16.mxu0 %v4612_v63  ;;  %4289 = vmatpush3.bf16.msra.mxu1 %v4610_v60  ;;  %v613_v24 = vpack.c.bf16 %v597_v22, %v596_v21  ;;  %v614_v26 = vpack.c.bf16 %v598_v25, %v598_v25  ;;  %v4615_v28 = vld [vmem:[%s6298_s2 + $0x18] sm:$0xff]   ;;  %v4616_v29 = vld [vmem:[%s6298_s2 + $0x50] sm:$0xff]   ;;  %v4619_v31 = vld [vmem:[%s6298_s2 + $0x48] sm:$0xff]  }
  0x39   : > { %4290 = vmatprep.subr.bf16.mxu1 %v4611_v62  ;;  %v4618_v30 = vld [vmem:[%s6298_s2 + $0x10] sm:$0xff]   ;;  %v4617_v32 = vld [vmem:[%s6298_s2 + $0x98] sm:$0xff]   ;;  %v4620_v33 = vld [vmem:[%s6298_s2 + $0x8] sm:$0xff]   ;;  %v5026_v62 = vmov 0.0  }
  0x3a   : > { %v4621_v34 = vld [vmem:[%s6298_s2 + $0x40] sm:$0xff]   ;;  %v4622_v36 = vld [vmem:[%s6298_s2 + $0x90] sm:$0xff]   ;;  %v4624_v37 = vld [vmem:[%s6298_s2 + $0x88] sm:$0xff]  }
  0x3b   : > { %4547 = vmatpush3.bf16.msra.mxu0 %v4612_v63  ;;  %v4623_v35 = vld [vmem:[%s6298_s2] sm:$0xff]   ;;  %v4628_v39 = vld [vmem:[%s6299_s3 + $0x74] ss:$8 sps:$4 sm:$0xff]   ;;  %v4626_v60 = vld [vmem:[%s6299_s3 + $0x70] ss:$8 sps:$4 sm:$0xff]  }
  0x3c   : > { %4291 = vmatpush3.bf16.msra.mxu1 %v4613_v2  ;;  %4548 = vmatprep.subr.bf16.mxu0 %v4617_v32  ;;  %v4625_v38 = vld [vmem:[%s6298_s2 + $0x80] sm:$0xff]   ;;  %v4634_v9 = vld [vmem:[%s6299_s3 + $0x54] ss:$8 sps:$4 sm:$0xff]   ;;  %v4632_v16 = vld [vmem:[%s6299_s3 + $0x50] ss:$8 sps:$4 sm:$0xff]  }
  0x3d   : > { %4292 = vmatprep.subr.bf16.mxu1 %v4614_v27  ;;  %v4631_v0 = vld [vmem:[%s6299_s3 + $0x64] ss:$8 sps:$4 sm:$0xff]   ;;  %v4629_v7 = vld [vmem:[%s6299_s3 + $0x60] ss:$8 sps:$4 sm:$0xff]   ;;  %v4640_v27 = vld [vmem:[%s6299_s3 + $0x34] ss:$8 sps:$4 sm:$0xff]  }
  0x3e   : > { %4517 = vmatmul.mubr.msk.bf16.gmra.mxu0 %vm623_vm0, %v604_v59  ;;  %v4635_v25 = vld [vmem:[%s6299_s3 + $0x40] ss:$8 sps:$4 sm:$0xff]  }
  0x3f   : > { %4520 = vmatprep.mubr.msk.bf16.mxu0 %vm623_vm0, %v605_v61  ;;  %4549 = vmatpush3.bf16.msra.mxu0 %v4617_v32 }
  0x40   : > { %4293 = vmatpush3.bf16.msra.mxu1 %v4615_v28  ;;  %4550 = vmatprep.subr.bf16.mxu0 %v4622_v36 }
  0x41   : > { %4294 = vmatprep.subr.bf16.mxu1 %v4616_v29 }
  0x43   : > { %4551 = vmatpush3.bf16.msra.mxu0 %v4622_v36  ;;  %v4643_v36 = vld [vmem:[%s6299_s3 + $0x24] ss:$8 sps:$4 sm:$0xff]  }
  0x44   : > { %4295 = vmatpush3.bf16.msra.mxu1 %v4618_v30  ;;  %4552 = vmatprep.subr.bf16.mxu0 %v4624_v37 }
  0x45   : > { %4296 = vmatprep.subr.bf16.mxu1 %v4619_v31 }
  0x46   : > { %4521 = vmatmul.mubr.msk.bf16.gmra.mxu0 %vm623_vm0, %v606_v5 }
  0x47   : > { %4524 = vmatprep.mubr.msk.bf16.mxu0 %vm623_vm0, %v607_v6  ;;  %4553 = vmatpush3.bf16.msra.mxu0 %v4624_v37 }
  0x48   : > { %4297 = vmatpush3.bf16.msra.mxu1 %v4620_v33  ;;  %4554 = vmatprep.subr.bf16.mxu0 %v4625_v38 }
  0x49   : > { %4298 = vmatprep.subr.bf16.mxu1 %v4621_v34  ;;  %v4638_v34 = vld [vmem:[%s6299_s3 + $0x30] ss:$8 sps:$4 sm:$0xff]  }
  0x4b   : > { %4555 = vmatpush3.bf16.msra.mxu0 %v4625_v38 }
  0x4c   : > { %4299 = vmatpush3.bf16.msra.mxu1 %v4623_v35 }
  0x4d   : > { %1621 = vmatprep.subr.bf16.mxu1 %v4628_v39 }
  0x4e   : > { %4525 = vmatmul.mubr.msk.bf16.gmra.mxu0 %vm623_vm0, %v608_v11 }
  0x4f   : > { %4528 = vmatprep.mubr.msk.bf16.mxu0 %vm623_vm0, %v609_v12 }
  0x56   : > { %4529 = vmatmul.mubr.msk.bf16.gmra.mxu0 %vm623_vm0, %v610_v17 }
  0x57   : > { %4532 = vmatprep.mubr.msk.bf16.mxu0 %vm623_vm0, %v611_v18  ;;  %v4637_v18 = vld [vmem:[%s6299_s3 + $0x44] ss:$8 sps:$4 sm:$0xff]  }
  0x5e   : > { %4533 = vmatmul.mubr.msk.bf16.gmra.mxu0 %vm623_vm0, %v612_v23 }
  0x5f   : > { %4536 = vmatprep.mubr.msk.bf16.mxu0 %vm623_vm0, %v613_v24 }
  0x66   : > { %4537 = vmatmul.mubr.msk.bf16.gmra.mxu0 %vm623_vm0, %v614_v26 }
  0xee   : > { %v4510_v40 = vpop.f32.mrf.mxu0 }
  0xef   : > { %v834_v48 = vmax.f32 %v4510_v40, 0.0 }
  0xf0   : > { %v706_v41 = vpop.f32.mrf.mxu0 }
  0xf1   : > { %v832_v44 = vmax.f32 %v706_v41, 0.0 }
  0xf2   : > { %v4511_v42 = vpop.f32.mrf.mxu0 }
  0xf3   : > { %v835_v45 = vmax.f32 %v4511_v42, 0.0 }
  0xf4   : > { %v709_v43 = vpop.f32.mrf.mxu0 }
  0xf5   : > { %v833_v46 = vmax.f32 %v709_v43, 0.0  ;;  %v865_v51 = vmax.f32 %v834_v48, %v835_v45  ;;  %v4641_v43 = vld [vmem:[%s6299_s3 + $0x20] ss:$8 sps:$4 sm:$0xff]  }
  0xf6   : > { %v4514_v47 = vpop.f32.mrf.mxu0 }
  0xf7   : > { %v863_v49 = vmax.f32 %v832_v44, %v833_v46  ;;  %v838_v1 = vmax.f32 %v4514_v47, 0.0 }
  0xf8   : > { %v722_v50 = vpop.f32.mrf.mxu0 }
  0xf9   : > { %v836_v52 = vmax.f32 %v722_v50, 0.0  ;;  %v864_v54 = vmax.f32 %v863_v49, %v834_v48 }
  0xfa   : > { %v4515_v53 = vpop.f32.mrf.mxu0 }
  0xfb   : > { %v866_v55 = vmax.f32 %v865_v51, %v836_v52  ;;  %v839_v57 = vmax.f32 %v4515_v53, 0.0  ;;  %v893_v63 = vpack.c.bf16 %v864_v54, %v5026_v62 }
  0xfc   : > { %v725_v56 = vpop.f32.mrf.mxu0 }
  0xfd   : > { %v837_v58 = vmax.f32 %v725_v56, 0.0  ;;  %v894_v59 = vpack.c.bf16 %v866_v55, %v864_v54  ;;  %v869_v4 = vmax.f32 %v838_v1, %v839_v57 }
  0xfe   : > { %v4518_v61 = vpop.f32.mrf.mxu0 }
  0xff   : > { %v867_v2 = vmax.f32 %v836_v52, %v837_v58  ;;  %1135 = vmatprep.mubr.bf16.mxu1 %v894_v59  ;;  %v842_v19 = vmax.f32 %v4518_v61, 0.0 }
 0x100   : > { %v738_v3 = vpop.f32.mrf.mxu0  ;;  %1136 = vmatmul.mubr.bf16.vlgmr.msra.gmra.mxu1 %v893_v63 }
 0x101   : > { %v868_v5 = vmax.f32 %v867_v2, %v838_v1  ;;  %v840_v6 = vmax.f32 %v738_v3, 0.0  ;;  %1622 = vmatpush1.bf16.msra.mxu1 %v4626_v60 }
 0x102   : > { %v4519_v8 = vpop.f32.mrf.mxu0  ;;  %1623 = vmatprep.subr.bf16.mxu1 %v4631_v0 }
 0x103   : > { %v870_v10 = vmax.f32 %v869_v4, %v840_v6  ;;  %v895_v11 = vpack.c.bf16 %v868_v5, %v866_v55  ;;  %v843_v13 = vmax.f32 %v4519_v8, 0.0 }
 0x104   : > { %v741_v12 = vpop.f32.mrf.mxu0 }
 0x105   : > { %v841_v14 = vmax.f32 %v741_v12, 0.0  ;;  %4556 = vmatprep.mubr.bf16.mxu0 %v895_v11  ;;  %v896_v15 = vpack.c.bf16 %v870_v10, %v868_v5  ;;  %1624 = vmatpush1.bf16.msra.mxu1 %v4629_v7  ;;  %v873_v22 = vmax.f32 %v842_v19, %v843_v13 }
 0x106   : > { %v4522_v17 = vpop.f32.mrf.mxu0  ;;  %1625 = vmatprep.subr.bf16.mxu1 %v4634_v9 }
 0x107   : > { %v871_v20 = vmax.f32 %v840_v6, %v841_v14  ;;  %1143 = vmatprep.mubr.bf16.mxu1 %v896_v15  ;;  %v846_v37 = vmax.f32 %v4522_v17, 0.0 }
 0x108   : > { %v754_v21 = vpop.f32.mrf.mxu0  ;;  %1144 = vmatmul.mubr.bf16.gmra.mxu1 %v895_v11 }
 0x109   : > { %v872_v23 = vmax.f32 %v871_v20, %v842_v19  ;;  %v844_v24 = vmax.f32 %v754_v21, 0.0  ;;  %1626 = vmatpush1.bf16.msra.mxu1 %v4632_v16 }
 0x10a   : > { %v4523_v26 = vpop.f32.mrf.mxu0  ;;  %1627 = vmatprep.subr.bf16.mxu1 %v4637_v18 }
 0x10b   : > { %v897_v28 = vpack.c.bf16 %v872_v23, %v870_v10  ;;  %v874_v29 = vmax.f32 %v873_v22, %v844_v24  ;;  %v847_v31 = vmax.f32 %v4523_v26, 0.0 }
 0x10c   : > { %v757_v30 = vpop.f32.mrf.mxu0 }
 0x10d   : > { %v845_v32 = vmax.f32 %v757_v30, 0.0  ;;  %4557 = vmatmul.mubr.bf16.vlgmr.msra.gmra.mxu0 %v897_v28  ;;  %v898_v33 = vpack.c.bf16 %v874_v29, %v872_v23  ;;  %1628 = vmatpush1.bf16.msra.mxu1 %v4635_v25  ;;  %v877_v40 = vmax.f32 %v846_v37, %v847_v31 }
 0x10e   : > { %v4526_v35 = vpop.f32.mrf.mxu0  ;;  %1629 = vmatprep.subr.bf16.mxu1 %v4640_v27 }
 0x10f   : > { %v875_v38 = vmax.f32 %v844_v24, %v845_v32  ;;  %1151 = vmatprep.mubr.bf16.mxu1 %v898_v33  ;;  %v850_v52 = vmax.f32 %v4526_v35, 0.0  ;;  %v5027_v35 = vmov 0.0|0.0  }
 0x110   : > { %v770_v39 = vpop.f32.mrf.mxu0  ;;  %1152 = vmatmul.mubr.bf16.gmra.mxu1 %v897_v28 }
 0x111   : > { %v876_v41 = vmax.f32 %v875_v38, %v846_v37  ;;  %v848_v42 = vmax.f32 %v770_v39, 0.0  ;;  %1630 = vmatpush1.bf16.msra.mxu1 %v4638_v34  ;;  %v4644_v37 = vld [vmem:[%s6299_s3 + $0x10] ss:$8 sps:$4 sm:$0xff]   ;;  %v4649_v38 = vld [vmem:[%s6299_s3 + $0x4] ss:$8 sps:$4 sm:$0xff]  }
 0x112   : > { %v4527_v44 = vpop.f32.mrf.mxu0  ;;  %1631 = vmatprep.subr.bf16.mxu1 %v4643_v36  ;;  %v4646_v36 = vld [vmem:[%s6299_s3 + $0x14] ss:$8 sps:$4 sm:$0xff]   ;;  %v4647_v39 = vld [vmem:[%s6299_s3] ss:$8 sps:$4 sm:$0xff]  }
 0x113   : > { %v878_v45 = vmax.f32 %v877_v40, %v848_v42  ;;  %v899_v46 = vpack.c.bf16 %v876_v41, %v874_v29  ;;  %v851_v48 = vmax.f32 %v4527_v44, 0.0  ;;  %v4652_v40 = vld [vmem:[%s6299_s3 + $0xf4] ss:$8 sps:$4 sm:$0xff]  }
 0x114   : > { %v773_v47 = vpop.f32.mrf.mxu0  ;;  %v4658_v44 = vld [vmem:[%s6299_s3 + $0x174] ss:$8 sps:$4 sm:$0xff]  }
 0x115   : > { %v849_v49 = vmax.f32 %v773_v47, 0.0  ;;  %4560 = vmatprep.mubr.bf16.mxu0 %v899_v46  ;;  %v900_v50 = vpack.c.bf16 %v878_v45, %v876_v41  ;;  %1632 = vmatpush1.bf16.msra.mxu1 %v4641_v43  ;;  %v881_v55 = vmax.f32 %v850_v52, %v851_v48  ;;  %v4650_v41 = vld [vmem:[%s6299_s3 + $0xf0] ss:$8 sps:$4 sm:$0xff]   ;;  %v4653_v43 = vld [vmem:[%s6299_s3 + $0xe0] ss:$8 sps:$4 sm:$0xff]  }
 0x116   : > { %v4530_v51 = vpop.f32.mrf.mxu0  ;;  %1633 = vmatprep.subr.bf16.mxu1 %v4646_v36  ;;  %1692 = vmatprep.subr.bf16.mxu0 %v4658_v44  ;;  %v4659_v47 = vld [vmem:[%s6299_s3 + $0xd0] ss:$8 sps:$4 sm:$0xff]   ;;  %v4664_v48 = vld [vmem:[%s6299_s3 + $0x164] ss:$8 sps:$4 sm:$0xff]  }
 0x117   : > { %v879_v53 = vmax.f32 %v848_v42, %v849_v49  ;;  %1159 = vmatprep.mubr.bf16.mxu1 %v900_v50  ;;  %v854_v59 = vmax.f32 %v4530_v51, 0.0  ;;  %v4655_v42 = vld [vmem:[%s6299_s3 + $0xe4] ss:$8 sps:$4 sm:$0xff]   ;;  %v4662_v49 = vld [vmem:[%s6299_s3 + $0x160] ss:$8 sps:$4 sm:$0xff]  }
 0x118   : > { %v786_v54 = vpop.f32.mrf.mxu0  ;;  %1160 = vmatmul.mubr.bf16.gmra.mxu1 %v899_v46  ;;  %v4661_v46 = vld [vmem:[%s6299_s3 + $0xd4] ss:$8 sps:$4 sm:$0xff]   ;;  %v4667_v50 = vld [vmem:[%s6299_s3 + $0xc4] ss:$8 sps:$4 sm:$0xff]   ;;  %v4665_v51 = vld [vmem:[%s6299_s3 + $0xc0] ss:$8 sps:$4 sm:$0xff]  }
 0x119   : > { %v880_v56 = vmax.f32 %v879_v53, %v850_v52  ;;  %v852_v57 = vmax.f32 %v786_v54, 0.0  ;;  %1634 = vmatpush1.bf16.msra.mxu1 %v4644_v37  ;;  %v4670_v52 = vld [vmem:[%s6299_s3 + $0x154] ss:$8 sps:$4 sm:$0xff]   ;;  %v4668_v53 = vld [vmem:[%s6299_s3 + $0x150] ss:$8 sps:$4 sm:$0xff]  }
 0x11a   : > { %v4531_v58 = vpop.f32.mrf.mxu0  ;;  %1635 = vmatprep.subr.bf16.mxu1 %v4649_v38  ;;  %v4673_v54 = vld [vmem:[%s6299_s3 + $0xb4] ss:$8 sps:$4 sm:$0xff]  }
 0x11b   : > { %v882_v60 = vmax.f32 %v881_v55, %v852_v57  ;;  %v855_v61 = vmax.f32 %v4531_v58, 0.0  ;;  %v901_v63 = vpack.c.bf16 %v880_v56, %v878_v45  ;;  %v4656_v45 = vld [vmem:[%s6299_s3 + $0x170] ss:$8 sps:$4 sm:$0xff]   ;;  %v4679_v58 = vld [vmem:[%s6299_s3 + $0xa4] ss:$8 sps:$4 sm:$0xff]  }
 0x11c   : > { %v789_v0 = vpop.f32.mrf.mxu0  ;;  %1693 = vmatpush1.bf16.msra.mxu0 %v4656_v45  ;;  %v4671_v55 = vld [vmem:[%s6299_s3 + $0xb0] ss:$8 sps:$4 sm:$0xff]  }
 0x11d   : > { %v853_v1 = vmax.f32 %v789_v0, 0.0  ;;  %4561 = vmatmul.mubr.bf16.gmra.mxu0 %v901_v63  ;;  %v902_v2 = vpack.c.bf16 %v882_v60, %v880_v56  ;;  %v885_v4 = vmax.f32 %v854_v59, %v855_v61  ;;  %1636 = vmatpush1.bf16.msra.mxu1 %v4647_v39  ;;  %v4676_v56 = vld [vmem:[%s6299_s3 + $0x144] ss:$8 sps:$4 sm:$0xff]   ;;  %v4680_v61 = vld [vmem:[%s6299_s3 + $0x130] ss:$8 sps:$4 sm:$0xff]  }
 0x11e   : > { %v4534_v3 = vpop.f32.mrf.mxu0  ;;  %1637 = vmatprep.subr.bf16.mxu1 %v4652_v40  ;;  %1694 = vmatprep.subr.bf16.mxu0 %v4664_v48  ;;  %v4683_v0 = vld [vmem:[%s6299_s3 + $0x90] ss:$8 sps:$4 sm:$0xff]  }
 0x11f   : > { %v883_v5 = vmax.f32 %v852_v57, %v853_v1  ;;  %1167 = vmatprep.mubr.bf16.mxu1 %v902_v2  ;;  %v858_v10 = vmax.f32 %v4534_v3, 0.0  ;;  %v4674_v57 = vld [vmem:[%s6299_s3 + $0x140] ss:$8 sps:$4 sm:$0xff]   ;;  %v4688_v1 = vld [vmem:[%s6299_s3 + $0x124] ss:$8 sps:$4 sm:$0xff]  }
 0x120   : > { %v802_v6 = vpop.f32.mrf.mxu0  ;;  %1168 = vmatmul.mubr.bf16.gmra.mxu1 %v901_v63  ;;  %1695 = vmatpush1.bf16.msra.mxu0 %v4662_v49  ;;  %v4685_v63 = vld [vmem:[%s6299_s3 + $0x94] ss:$8 sps:$4 sm:$0xff]   ;;  %v4686_v2 = vld [vmem:[%s6299_s3 + $0x120] ss:$8 sps:$4 sm:$0xff]   ;;  %v4691_v3 = vld [vmem:[%s6299_s3 + $0x84] ss:$8 sps:$4 sm:$0xff]  }
 0x121   : > { %v884_v7 = vmax.f32 %v883_v5, %v854_v59  ;;  %v856_v8 = vmax.f32 %v802_v6, 0.0  ;;  %1638 = vmatpush2.bf16.msra.mxu1 %v4650_v41  ;;  %1696 = vmatprep.subr.bf16.mxu0 %v4670_v52  ;;  %v4677_v59 = vld [vmem:[%s6299_s3 + $0xa0] ss:$8 sps:$4 sm:$0xff]   ;;  %v4694_v5 = vld [vmem:[%s6299_s3 + $0x114] ss:$8 sps:$4 sm:$0xff]  }
 0x122   : > { %v4535_v9 = vpop.f32.mrf.mxu0  ;;  %1639 = vmatprep.subr.bf16.mxu1 %v4655_v42  ;;  %v4692_v6 = vld [vmem:[%s6299_s3 + $0x110] ss:$8 sps:$4 sm:$0xff]  }
 0x123   : > { %v886_v11 = vmax.f32 %v885_v4, %v856_v8  ;;  %v859_v12 = vmax.f32 %v4535_v9, 0.0  ;;  %v903_v13 = vpack.c.bf16 %v884_v7, %v882_v60  ;;  %v4682_v60 = vld [vmem:[%s6299_s3 + $0x134] ss:$8 sps:$4 sm:$0xff]   ;;  %v4689_v4 = vld [vmem:[%s6299_s3 + $0x80] ss:$8 sps:$4 sm:$0xff]   ;;  %v5028_v9 = vmov 0  }
 0x124   : > { %v805_v14 = vpop.f32.mrf.mxu0  ;;  %1697 = vmatpush1.bf16.msra.mxu0 %v4668_v53 }
 0x125   : > { %v857_v15 = vmax.f32 %v805_v14, 0.0  ;;  %4564 = vmatprep.mubr.bf16.mxu0 %v903_v13  ;;  %v904_v16 = vpack.c.bf16 %v886_v11, %v884_v7  ;;  %v889_v18 = vmax.f32 %v858_v10, %v859_v12  ;;  %1640 = vmatpush2.bf16.msra.mxu1 %v4653_v43  ;;  %v4697_v7 = vld [vmem:[%s6299_s3 + $0x104] ss:$8 sps:$4 sm:$0xff]  }
 0x126   : > { %v4538_v17 = vpop.f32.mrf.mxu0  ;;  %1641 = vmatprep.subr.bf16.mxu1 %v4661_v46  ;;  %1698 = vmatprep.subr.bf16.mxu0 %v4676_v56 }
 0x127   : > { %v887_v19 = vmax.f32 %v856_v8, %v857_v15  ;;  %1175 = vmatprep.mubr.bf16.mxu1 %v904_v16  ;;  %v862_v27 = vmax.f32 %v4538_v17, 0.0  ;;  %v4695_v8 = vld [vmem:[%s6299_s3 + $0x100] ss:$8 sps:$4 sm:$0xff]  }
 0x128   : > { %v818_v20 = vpop.f32.mrf.mxu0  ;;  %1176 = vmatmul.mubr.bf16.gmra.mxu1 %v903_v13  ;;  %1699 = vmatpush1.bf16.msra.mxu0 %v4674_v57 }
 0x129   : > { %v888_v21 = vmax.f32 %v887_v19, %v858_v10  ;;  %v860_v22 = vmax.f32 %v818_v20, 0.0  ;;  %1642 = vmatpush2.bf16.msra.mxu1 %v4659_v47  ;;  %1700 = vmatprep.subr.bf16.mxu0 %v4682_v60  ;;  %v4700_v10 = vld [vmem:[%s6300_s4 + $0x74] ss:$8 sps:$4 sm:$0xff]  }
 0x12a   : > { %v4539_v23 = vpop.f32.mrf.mxu0  ;;  %1643 = vmatprep.subr.bf16.mxu1 %v4667_v50 }
 0x12b   : > { %v890_v24 = vmax.f32 %v889_v18, %v860_v22  ;;  %v905_v25 = vpack.c.bf16 %v888_v21, %v886_v11  ;;  %v4706_v11 = vld [vmem:[%s6300_s4 + $0x174] ss:$8 sps:$4 sm:$0xff]  }
 0x12c   : > { %v821_v26 = vpop.f32.mrf.mxu0  ;;  %1701 = vmatpush1.bf16.msra.mxu0 %v4680_v61 }
 0x12d   : > { %v861_v28 = vmax.f32 %v821_v26, 0.0  ;;  %4565 = vmatmul.mubr.bf16.gmra.mxu0 %v905_v25  ;;  %v906_v29 = vpack.c.bf16 %v890_v24, %v888_v21  ;;  %v908_v34 = vpack.c.bf16 %v890_v24, %v890_v24  ;;  %1644 = vmatpush2.bf16.msra.mxu1 %v4665_v51 }
 0x12e   : > { %1645 = vmatprep.subr.bf16.mxu1 %v4673_v54  ;;  %1702 = vmatprep.subr.bf16.mxu0 %v4688_v1 }
 0x12f   : > { %v891_v30 = vmax.f32 %v860_v22, %v861_v28  ;;  %1183 = vmatprep.mubr.bf16.mxu1 %v906_v29 }
 0x130   : > { %1184 = vmatmul.mubr.bf16.gmra.mxu1 %v905_v25  ;;  %1703 = vmatpush1.bf16.msra.mxu0 %v4686_v2 }
 0x131   : > { %v892_v31 = vmax.f32 %v891_v30, %v862_v27  ;;  %1646 = vmatpush2.bf16.msra.mxu1 %v4671_v55  ;;  %1704 = vmatprep.subr.bf16.mxu0 %v4694_v5 }
 0x132   : > { %1647 = vmatprep.subr.bf16.mxu1 %v4679_v58 }
 0x133   : > { %v907_v32 = vpack.c.bf16 %v892_v31, %v890_v24  ;;  %v909_v33 = vpack.c.bf16 %v892_v31, %v892_v31 }
 0x134   : > { %1705 = vmatpush1.bf16.msra.mxu0 %v4692_v6  ;;  %v4703_v6 = vld [vmem:[%s6300_s4 + $0x64] ss:$8 sps:$4 sm:$0xff]  }
 0x135   : > { %4568 = vmatprep.mubr.bf16.mxu0 %v907_v32  ;;  %1191 = vmatprep.mubr.bf16.mxu1 %v909_v33 }
 0x136   : > { %4569 = vmatmul.mubr.bf16.gmra.mxu0 %v5027_v35  ;;  %1648 = vmatpush2.bf16.msra.mxu1 %v4677_v59 }
 0x137   : > { %1649 = vmatprep.subr.bf16.mxu1 %v4685_v63  ;;  %1706 = vmatprep.subr.bf16.mxu0 %v4697_v7 }
 0x138   : > { %1192 = vmatmul.mubr.bf16.gmra.mxu1 %v908_v34  ;;  %1707 = vmatpush1.bf16.msra.mxu0 %v4695_v8 }
 0x139   : > { %1724 = vmatprep.mubr.bf16.mxu0 %v5028_v9  ;;  %2442 = vmatprep.subr.bf16.mxu0 %v4706_v11 }
 0x13a   : > { %1650 = vmatpush2.bf16.msra.mxu1 %v4683_v0 }
 0x13b   : > { %1651 = vmatprep.subr.bf16.mxu1 %v4691_v3 }
 0x13e   : > { %1652 = vmatpush2.bf16.msra.mxu1 %v4689_v4  ;;  %v4698_v4 = vld [vmem:[%s6300_s4 + $0x70] ss:$8 sps:$4 sm:$0xff]  }
 0x13f   : > { %2371 = vmatprep.subr.bf16.mxu1 %v4700_v10 }
 0x1c0   : > { %v4300_v12 = vpop.f32.mrf.mxu1 }
 0x1c2   : > { %v4301_v13 = vpop.f32.mrf.mxu1 }
 0x1c3   : > { %v4302_v30 = vadd.f32 %v4301_v13, %v4300_v12 }
 0x1c4   : > { %v4303_v14 = vpop.f32.mrf.mxu1 }
 0x1c6   : > { %v4304_v15 = vpop.f32.mrf.mxu1 }
 0x1c7   : > { %v4305_v27 = vadd.f32 %v4304_v15, %v4303_v14  ;;  %v4701_v14 = vld [vmem:[%s6300_s4 + $0x60] ss:$8 sps:$4 sm:$0xff]   ;;  %v4704_v15 = vld [vmem:[%s6300_s4 + $0x170] ss:$8 sps:$4 sm:$0xff]  }
 0x1c8   : > { %v4306_v16 = vpop.f32.mrf.mxu1 }
 0x1ca   : > { %v4307_v17 = vpop.f32.mrf.mxu1 }
 0x1cb   : > { %v4308_v32 = vadd.f32 %v4307_v17, %v4306_v16 }
 0x1cc   : > { %v4309_v18 = vpop.f32.mrf.mxu1 }
 0x1cd   : > { %v4558_v19 = vpop.f32.mrf.mxu0 }
 0x1ce   : > { %v4310_v20 = vpop.f32.mrf.mxu1  ;;  %v1242_v39 = vadd.f32 %v4558_v19, %v4308_v32  ;;  %v4712_v19 = vld [vmem:[%s6300_s4 + $0x164] ss:$8 sps:$4 sm:$0xff]   ;;  %v4718_v32 = vld [vmem:[%s6300_s4 + $0x154] ss:$8 sps:$4 sm:$0xff]  }
 0x1cf   : > { %v1233_v21 = vpop.f32.mrf.mxu0  ;;  %v4311_v28 = vadd.f32 %v4310_v20, %v4309_v18  ;;  %v4709_v18 = vld [vmem:[%s6300_s4 + $0x54] ss:$8 sps:$4 sm:$0xff]  }
 0x1d0   : > { %v4312_v22 = vpop.f32.mrf.mxu1  ;;  %v1234_v34 = vadd.f32 %v4302_v30, %v1233_v21  ;;  %v1297_v48 = vmax.f32 %v1242_v39, 0.0  ;;  %v4713_v39 = vld [vmem:[%s6300_s4 + $0x40] ss:$8 sps:$4 sm:$0xff]  }
 0x1d1   : > { %v4559_v23 = vpop.f32.mrf.mxu0 }
 0x1d2   : > { %v4313_v24 = vpop.f32.mrf.mxu1  ;;  %v1245_v36 = vadd.f32 %v4559_v23, %v4311_v28  ;;  %v1295_v41 = vmax.f32 %v1234_v34, 0.0  ;;  %v4715_v28 = vld [vmem:[%s6300_s4 + $0x44] ss:$8 sps:$4 sm:$0xff]  }
 0x1d3   : > { %v1236_v25 = vpop.f32.mrf.mxu0  ;;  %v4314_v44 = vadd.f32 %v4313_v24, %v4312_v22  ;;  %v4707_v24 = vld [vmem:[%s6300_s4 + $0x50] ss:$8 sps:$4 sm:$0xff]  }
 0x1d4   : > { %v4315_v26 = vpop.f32.mrf.mxu1  ;;  %v1237_v31 = vadd.f32 %v4305_v27, %v1236_v25  ;;  %v1298_v43 = vmax.f32 %v1245_v36, 0.0  ;;  %v4710_v27 = vld [vmem:[%s6300_s4 + $0x160] ss:$8 sps:$4 sm:$0xff]  }
 0x1d6   : > { %v4316_v29 = vpop.f32.mrf.mxu1  ;;  %v1296_v38 = vmax.f32 %v1237_v31, 0.0  ;;  %v1312_v53 = vmax.f32 %v1297_v48, %v1298_v43  ;;  %v4721_v43 = vld [vmem:[%s6300_s4 + $0x34] ss:$8 sps:$4 sm:$0xff]  }
 0x1d7   : > { %v4317_v54 = vadd.f32 %v4316_v29, %v4315_v26 }
 0x1d8   : > { %v4318_v33 = vpop.f32.mrf.mxu1  ;;  %v1310_v46 = vmax.f32 %v1295_v41, %v1296_v38 }
 0x1da   : > { %v4319_v37 = vpop.f32.mrf.mxu1  ;;  %v1311_v57 = vmax.f32 %v1310_v46, %v1297_v48  ;;  %v4724_v48 = vld [vmem:[%s6300_s4 + $0x144] ss:$8 sps:$4 sm:$0xff]  }
 0x1db   : > { %v4320_v49 = vadd.f32 %v4319_v37, %v4318_v33 }
 0x1dc   : > { %v4321_v40 = vpop.f32.mrf.mxu1  ;;  %v1324_v5 = vpack.c.bf16 %v1311_v57, %v5026_v62 }
 0x1dd   : > { %v4562_v42 = vpop.f32.mrf.mxu0 }
 0x1de   : > { %v4322_v45 = vpop.f32.mrf.mxu1  ;;  %v1258_v59 = vadd.f32 %v4562_v42, %v4320_v49  ;;  %v4716_v42 = vld [vmem:[%s6300_s4 + $0x150] ss:$8 sps:$4 sm:$0xff]  }
 0x1df   : > { %v1249_v47 = vpop.f32.mrf.mxu0  ;;  %v4323_v0 = vadd.f32 %v4322_v45, %v4321_v40 }
 0x1e0   : > { %v1250_v50 = vadd.f32 %v4314_v44, %v1249_v47  ;;  %v4324_v51 = vpop.f32.mrf.mxu1  ;;  %v1301_v7 = vmax.f32 %v1258_v59, 0.0 }
 0x1e1   : > { %v4563_v52 = vpop.f32.mrf.mxu0 }
 0x1e2   : > { %v1299_v55 = vmax.f32 %v1250_v50, 0.0  ;;  %v4325_v56 = vpop.f32.mrf.mxu1  ;;  %v1261_v11 = vadd.f32 %v4563_v52, %v4323_v0 }
 0x1e3   : > { %v1252_v58 = vpop.f32.mrf.mxu0  ;;  %v4326_v22 = vadd.f32 %v4325_v56, %v4324_v51  ;;  %v4722_v56 = vld [vmem:[%s6300_s4 + $0x140] ss:$8 sps:$4 sm:$0xff]  }
 0x1e4   : > { %v1313_v60 = vmax.f32 %v1312_v53, %v1299_v55  ;;  %v1253_v61 = vadd.f32 %v4317_v54, %v1252_v58  ;;  %v4327_v63 = vpop.f32.mrf.mxu1  ;;  %v1302_v21 = vmax.f32 %v1261_v11, 0.0  ;;  %v4719_v54 = vld [vmem:[%s6300_s4 + $0x30] ss:$8 sps:$4 sm:$0xff]  }
 0x1e6   : > { %v1300_v1 = vmax.f32 %v1253_v61, 0.0  ;;  %v4328_v2 = vpop.f32.mrf.mxu1  ;;  %v1325_v3 = vpack.c.bf16 %v1313_v60, %v1311_v57  ;;  %v1316_v34 = vmax.f32 %v1301_v7, %v1302_v21  ;;  %v4727_v57 = vld [vmem:[%s6300_s4 + $0x24] ss:$8 sps:$4 sm:$0xff]  }
 0x1e7   : > { %v4329_v36 = vadd.f32 %v4328_v2, %v4327_v63  ;;  %v4730_v63 = vld [vmem:[%s6300_s4 + $0x134] ss:$8 sps:$4 sm:$0xff]  }
 0x1e8   : > { %v1314_v8 = vmax.f32 %v1299_v55, %v1300_v1  ;;  %v4330_v10 = vpop.f32.mrf.mxu1  ;;  %1653 = vmatprep.mubr.bf16.mxu1 %v1325_v3 }
 0x1e9   : > { %1654 = vmatmul.mubr.bf16.vlgmr.msra.gmra.mxu1 %v1324_v5 }
 0x1ea   : > { %v5481_v12 = vmax.f32 %v1314_v8, %v1301_v7  ;;  %v4331_v13 = vpop.f32.mrf.mxu1  ;;  %2372 = vmatpush1.bf16.msra.mxu1 %v4698_v4  ;;  %v4725_v4 = vld [vmem:[%s6300_s4 + $0x20] ss:$8 sps:$4 sm:$0xff]  }
 0x1eb   : > { %2373 = vmatprep.subr.bf16.mxu1 %v4703_v6  ;;  %v4332_v29 = vadd.f32 %v4331_v13, %v4330_v10  ;;  %v4728_v10 = vld [vmem:[%s6300_s4 + $0x130] ss:$8 sps:$4 sm:$0xff]  }
 0x1ec   : > { %v1326_v16 = vpack.c.bf16 %v5481_v12, %v1313_v60  ;;  %v4333_v17 = vpop.f32.mrf.mxu1 }
 0x1ed   : > { %v4566_v20 = vpop.f32.mrf.mxu0 }
 0x1ee   : > { %v4334_v23 = vpop.f32.mrf.mxu1  ;;  %1725 = vmatmul.mubr.bf16.vlgmr.msra.gmra.mxu0 %v1326_v16  ;;  %2374 = vmatpush1.bf16.msra.mxu1 %v4701_v14  ;;  %v1274_v44 = vadd.f32 %v4566_v20, %v4332_v29  ;;  %v4733_v14 = vld [vmem:[%s6300_s4 + $0x14] ss:$8 sps:$4 sm:$0xff]   ;;  %v4737_v29 = vld [vmem:[%s6300_s4] ss:$8 sps:$4 sm:$0xff]  }
 0x1ef   : > { %v4335_v25 = vadd.f32 %v4334_v23, %v4333_v17  ;;  %v1265_v26 = vpop.f32.mrf.mxu0  ;;  %1734 = vmatprep.mubr.bf16.mxu0 %v5028_v9  ;;  %2443 = vmatpush1.bf16.msra.mxu0 %v4704_v15  ;;  %v4736_v15 = vld [vmem:[%s6300_s4 + $0x124] ss:$8 sps:$4 sm:$0xff]   ;;  %v4731_v23 = vld [vmem:[%s6300_s4 + $0x10] ss:$8 sps:$4 sm:$0xff]  }
 0x1f0   : > { %v1266_v30 = vadd.f32 %v4326_v22, %v1265_v26  ;;  %v4336_v31 = vpop.f32.mrf.mxu1  ;;  %2375 = vmatprep.subr.bf16.mxu1 %v4709_v18  ;;  %2444 = vmatprep.subr.bf16.mxu0 %v4712_v19  ;;  %v1305_v58 = vmax.f32 %v1274_v44, 0.0  ;;  %v4742_v26 = vld [vmem:[%s6300_s4 + $0x114] ss:$8 sps:$4 sm:$0xff]   ;;  %v4755_v44 = vld [vmem:[%s6300_s4 + $0xd0] ss:$8 sps:$4 sm:$0xff]  }
 0x1f1   : > { %v4567_v33 = vpop.f32.mrf.mxu0 }
 0x1f2   : > { %v1303_v37 = vmax.f32 %v1266_v30, 0.0  ;;  %v4337_v38 = vpop.f32.mrf.mxu1  ;;  %2376 = vmatpush1.bf16.msra.mxu1 %v4707_v24  ;;  %v1277_v40 = vadd.f32 %v4567_v33, %v4335_v25  ;;  %v4734_v24 = vld [vmem:[%s6300_s4 + $0x120] ss:$8 sps:$4 sm:$0xff]   ;;  %v4739_v25 = vld [vmem:[%s6300_s4 + $0x4] ss:$8 sps:$4 sm:$0xff]  }
 0x1f3   : > { %v1268_v41 = vpop.f32.mrf.mxu0  ;;  %2445 = vmatpush1.bf16.msra.mxu0 %v4710_v27  ;;  %2377 = vmatprep.subr.bf16.mxu1 %v4715_v28  ;;  %v4338_v49 = vadd.f32 %v4337_v38, %v4336_v31  ;;  %v4745_v33 = vld [vmem:[%s6300_s4 + $0xf4] ss:$8 sps:$4 sm:$0xff]   ;;  %v4746_v38 = vld [vmem:[%s6300_s4 + $0x100] ss:$8 sps:$4 sm:$0xff]  }
 0x1f4   : > { %v1317_v45 = vmax.f32 %v1316_v34, %v1303_v37  ;;  %v1269_v46 = vadd.f32 %v4329_v36, %v1268_v41  ;;  %v4339_v47 = vpop.f32.mrf.mxu1  ;;  %2446 = vmatprep.subr.bf16.mxu0 %v4718_v32  ;;  %v1306_v55 = vmax.f32 %v1277_v40, 0.0  ;;  %v4740_v32 = vld [vmem:[%s6300_s4 + $0x110] ss:$8 sps:$4 sm:$0xff]   ;;  %v4748_v34 = vld [vmem:[%s6300_s4 + $0x104] ss:$8 sps:$4 sm:$0xff]  }
 0x1f5   : > { %v4749_v40 = vld [vmem:[%s6300_s4 + $0xe0] ss:$8 sps:$4 sm:$0xff]   ;;  %v4752_v41 = vld [vmem:[%s6300_s4 + $0x1f0] ss:$8 sps:$4 sm:$0xff]  }
 0x1f6   : > { %v1304_v50 = vmax.f32 %v1269_v46, 0.0  ;;  %v4340_v51 = vpop.f32.mrf.mxu1  ;;  %v4570_v52 = vpop.f32.mrf.mxu0  ;;  %v1327_v53 = vpack.c.bf16 %v1317_v45, %v5481_v12  ;;  %2378 = vmatpush1.bf16.msra.mxu1 %v4713_v39  ;;  %v1320_v5 = vmax.f32 %v1305_v58, %v1306_v55  ;;  %v4751_v39 = vld [vmem:[%s6300_s4 + $0xe4] ss:$8 sps:$4 sm:$0xff]   ;;  %v4773_v55 = vld [vmem:[%s6300_s4 + $0xa0] ss:$8 sps:$4 sm:$0xff]  }
 0x1f7   : > { %2447 = vmatpush1.bf16.msra.mxu0 %v4716_v42  ;;  %2379 = vmatprep.subr.bf16.mxu1 %v4721_v43  ;;  %v4341_v6 = vadd.f32 %v4340_v51, %v4339_v47  ;;  %v4757_v42 = vld [vmem:[%s6300_s4 + $0xd4] ss:$8 sps:$4 sm:$0xff]   ;;  %v4760_v43 = vld [vmem:[%s6300_s4 + $0x1e4] ss:$8 sps:$4 sm:$0xff]  }
 0x1f8   : > { %v1318_v59 = vmax.f32 %v1303_v37, %v1304_v50  ;;  %v4342_v60 = vpop.f32.mrf.mxu1  ;;  %v1281_v61 = vpop.f32.mrf.mxu0  ;;  %1663 = vmatprep.mubr.bf16.mxu1 %v1327_v53  ;;  %2448 = vmatprep.subr.bf16.mxu0 %v4724_v48  ;;  %v4743_v37 = vld [vmem:[%s6300_s4 + $0xf0] ss:$8 sps:$4 sm:$0xff]   ;;  %v4763_v46 = vld [vmem:[%s6300_s4 + $0xc4] ss:$8 sps:$4 sm:$0xff]   ;;  %v4766_v47 = vld [vmem:[%s6300_s4 + $0x1d4] ss:$8 sps:$4 sm:$0xff]  }
 0x1f9   : > { %v1282_v0 = vadd.f32 %v4338_v49, %v1281_v61  ;;  %1664 = vmatmul.mubr.bf16.gmra.mxu1 %v1326_v16  ;;  %v4761_v48 = vld [vmem:[%s6300_s4 + $0xc0] ss:$8 sps:$4 sm:$0xff]   ;;  %v4764_v49 = vld [vmem:[%s6300_s4 + $0x1d0] ss:$8 sps:$4 sm:$0xff]   ;;  %v4769_v50 = vld [vmem:[%s6300_s4 + $0xb4] ss:$8 sps:$4 sm:$0xff]  }
 0x1fa   : > { %v1319_v1 = vmax.f32 %v1318_v59, %v1305_v58  ;;  %v4343_v2 = vpop.f32.mrf.mxu1  ;;  %v4571_v3 = vpop.f32.mrf.mxu0  ;;  %2380 = vmatpush1.bf16.msra.mxu1 %v4719_v54  ;;  %v4772_v51 = vld [vmem:[%s6300_s4 + $0x1c4] ss:$8 sps:$4 sm:$0xff]   ;;  %v4770_v53 = vld [vmem:[%s6300_s4 + $0x1c0] ss:$8 sps:$4 sm:$0xff]   ;;  %v4781_v58 = vld [vmem:[%s6300_s4 + $0x94] ss:$8 sps:$4 sm:$0xff]  }
 0x1fb   : > { %v1307_v7 = vmax.f32 %v1282_v0, 0.0  ;;  %v4344_v8 = vadd.f32 %v4343_v2, %v4342_v60  ;;  %2449 = vmatpush1.bf16.msra.mxu0 %v4722_v56  ;;  %2381 = vmatprep.subr.bf16.mxu1 %v4727_v57  ;;  %v4775_v54 = vld [vmem:[%s6300_s4 + $0xa4] ss:$8 sps:$4 sm:$0xff]   ;;  %v4778_v56 = vld [vmem:[%s6300_s4 + $0x1b4] ss:$8 sps:$4 sm:$0xff]  }
 0x1fc   : > { %v4345_v11 = vpop.f32.mrf.mxu1  ;;  %v1284_v12 = vpop.f32.mrf.mxu0  ;;  %v1328_v13 = vpack.c.bf16 %v1319_v1, %v1317_v45  ;;  %2450 = vmatprep.subr.bf16.mxu0 %v4730_v63  ;;  %v4758_v45 = vld [vmem:[%s6300_s4 + $0x1e0] ss:$8 sps:$4 sm:$0xff]   ;;  %v4776_v57 = vld [vmem:[%s6300_s4 + $0x1b0] ss:$8 sps:$4 sm:$0xff]   ;;  %v4784_v60 = vld [vmem:[%s6300_s4 + $0x1a4] ss:$8 sps:$4 sm:$0xff]  }
 0x1fd   : > { %v1321_v16 = vmax.f32 %v1320_v5, %v1307_v7  ;;  %v1290_v17 = vadd.f32 %v4570_v52, %v4344_v8  ;;  %v1285_v18 = vadd.f32 %v4341_v6, %v1284_v12  ;;  %v4767_v52 = vld [vmem:[%s6300_s4 + $0xb0] ss:$8 sps:$4 sm:$0xff]   ;;  %v4782_v61 = vld [vmem:[%s6300_s4 + $0x1a0] ss:$8 sps:$4 sm:$0xff]   ;;  %v4787_v63 = vld [vmem:[%s6300_s4 + $0x84] ss:$8 sps:$4 sm:$0xff]  }
 0x1fe   : > { %v4346_v19 = vpop.f32.mrf.mxu1  ;;  %1735 = vmatmul.mubr.bf16.gmra.mxu0 %v1328_v13  ;;  %2382 = vmatpush1.bf16.msra.mxu1 %v4725_v4  ;;  %v4779_v59 = vld [vmem:[%s6300_s4 + $0x90] ss:$8 sps:$4 sm:$0xff]   ;;  %v4785_v0 = vld [vmem:[%s6300_s4 + $0x80] ss:$8 sps:$4 sm:$0xff]   ;;  %v4793_v3 = vld [vmem:[%s6300_s4 + $0x274] ss:$8 sps:$4 sm:$0xff]  }
 0x1ff   : > { %v1309_v20 = vmax.f32 %v1290_v17, 0.0  ;;  %v1308_v21 = vmax.f32 %v1285_v18, 0.0  ;;  %v1329_v22 = vpack.c.bf16 %v1321_v16, %v1319_v1  ;;  %1744 = vmatprep.mubr.bf16.mxu0 %v5028_v9  ;;  %2451 = vmatpush1.bf16.msra.mxu0 %v4728_v10  ;;  %v1331_v36 = vpack.c.bf16 %v1321_v16, %v1321_v16  ;;  %v4790_v1 = vld [vmem:[%s6300_s4 + $0x194] ss:$8 sps:$4 sm:$0xff]   ;;  %v4788_v2 = vld [vmem:[%s6300_s4 + $0x190] ss:$8 sps:$4 sm:$0xff]  }
 0x200   : > { %2383 = vmatprep.subr.bf16.mxu1 %v4733_v14  ;;  %2452 = vmatprep.subr.bf16.mxu0 %v4736_v15  ;;  %v4796_v4 = vld [vmem:[%s6300_s4 + $0x184] ss:$8 sps:$4 sm:$0xff]   ;;  %v4794_v5 = vld [vmem:[%s6300_s4 + $0x180] ss:$8 sps:$4 sm:$0xff]  }
 0x201   : > { %v1322_v27 = vmax.f32 %v1307_v7, %v1308_v21  ;;  %1673 = vmatprep.mubr.bf16.mxu1 %v1329_v22  ;;  %v4791_v22 = vld [vmem:[%s6300_s4 + $0x270] ss:$8 sps:$4 sm:$0xff]  }
 0x202   : > { %1674 = vmatmul.mubr.bf16.gmra.mxu1 %v1328_v13 }
 0x203   : > { %v1323_v28 = vmax.f32 %v1322_v27, %v1309_v20  ;;  %2384 = vmatpush1.bf16.msra.mxu1 %v4731_v23  ;;  %2453 = vmatpush1.bf16.msra.mxu0 %v4734_v24 }
 0x204   : > { %2385 = vmatprep.subr.bf16.mxu1 %v4739_v25  ;;  %2454 = vmatprep.subr.bf16.mxu0 %v4742_v26  ;;  %v4799_v25 = vld [vmem:[%s6300_s4 + $0x264] ss:$8 sps:$4 sm:$0xff]  }
 0x205   : > { %v1332_v30 = vpack.c.bf16 %v1323_v28, %v1323_v28  ;;  %v1330_v31 = vpack.c.bf16 %v1323_v28, %v1321_v16 }
 0x207   : > { %1683 = vmatprep.mubr.bf16.mxu1 %v1332_v30  ;;  %1745 = vmatmul.mubr.bf16.gmra.mxu0 %v1330_v31  ;;  %v4802_v31 = vld [vmem:[%s6300_s4 + $0x254] ss:$8 sps:$4 sm:$0xff]  }
 0x208   : > { %1754 = vmatprep.mubr.bf16.mxu0 %v5028_v9  ;;  %2386 = vmatpush1.bf16.msra.mxu1 %v4737_v29  ;;  %v4754_v9 = vld [vmem:[%s6300_s4 + $0x1f4] ss:$8 sps:$4 sm:$0xff]   ;;  %v4797_v29 = vld [vmem:[%s6300_s4 + $0x260] ss:$8 sps:$4 sm:$0xff]  }
 0x209   : > { %2455 = vmatpush1.bf16.msra.mxu0 %v4740_v32  ;;  %2387 = vmatprep.subr.bf16.mxu1 %v4745_v33 }
 0x20a   : > { %1684 = vmatmul.mubr.bf16.gmra.mxu1 %v1331_v36  ;;  %2456 = vmatprep.subr.bf16.mxu0 %v4748_v34  ;;  %v4800_v34 = vld [vmem:[%s6300_s4 + $0x250] ss:$8 sps:$4 sm:$0xff]  }
 0x20c   : > { %2388 = vmatpush2.bf16.msra.mxu1 %v4743_v37  ;;  %v4805_v37 = vld [vmem:[%s6300_s4 + $0x244] ss:$8 sps:$4 sm:$0xff]  }
 0x20d   : > { %2457 = vmatpush1.bf16.msra.mxu0 %v4746_v38  ;;  %2389 = vmatprep.subr.bf16.mxu1 %v4751_v39 }
 0x20e   : > { %2458 = vmatprep.subr.bf16.mxu0 %v4754_v9 }
 0x20f   : > { %1755 = vmatmul.mubr.bf16.gmra.mxu0 %v5027_v35 }
 0x210   : > { %2390 = vmatpush2.bf16.msra.mxu1 %v4749_v40 }
 0x211   : > { %2459 = vmatpush2.bf16.msra.mxu0 %v4752_v41  ;;  %2391 = vmatprep.subr.bf16.mxu1 %v4757_v42  ;;  %v4803_v41 = vld [vmem:[%s6300_s4 + $0x240] ss:$8 sps:$4 sm:$0xff]  }
 0x212   : > { %2460 = vmatprep.subr.bf16.mxu0 %v4760_v43 }
 0x214   : > { %2392 = vmatpush2.bf16.msra.mxu1 %v4755_v44 }
 0x215   : > { %2461 = vmatpush2.bf16.msra.mxu0 %v4758_v45  ;;  %2393 = vmatprep.subr.bf16.mxu1 %v4763_v46  ;;  %v4808_v45 = vld [vmem:[%s6300_s4 + $0x234] ss:$8 sps:$4 sm:$0xff]  }
 0x216   : > { %2462 = vmatprep.subr.bf16.mxu0 %v4766_v47 }
 0x218   : > { %2394 = vmatpush2.bf16.msra.mxu1 %v4761_v48 }
 0x219   : > { %2463 = vmatpush2.bf16.msra.mxu0 %v4764_v49  ;;  %2395 = vmatprep.subr.bf16.mxu1 %v4769_v50 }
 0x21a   : > { %2464 = vmatprep.subr.bf16.mxu0 %v4772_v51 }
 0x21c   : > { %2396 = vmatpush2.bf16.msra.mxu1 %v4767_v52  ;;  %v4806_v52 = vld [vmem:[%s6300_s4 + $0x230] ss:$8 sps:$4 sm:$0xff]  }
 0x21d   : > { %2465 = vmatpush2.bf16.msra.mxu0 %v4770_v53  ;;  %2397 = vmatprep.subr.bf16.mxu1 %v4775_v54 }
 0x21e   : > { %2466 = vmatprep.subr.bf16.mxu0 %v4778_v56  ;;  %v4811_v56 = vld [vmem:[%s6300_s4 + $0x224] ss:$8 sps:$4 sm:$0xff]  }
 0x220   : > { %2398 = vmatpush2.bf16.msra.mxu1 %v4773_v55 }
 0x221   : > { %2467 = vmatpush2.bf16.msra.mxu0 %v4776_v57  ;;  %2399 = vmatprep.subr.bf16.mxu1 %v4781_v58 }
 0x222   : > { %2468 = vmatprep.subr.bf16.mxu0 %v4784_v60 }
 0x224   : > { %2400 = vmatpush2.bf16.msra.mxu1 %v4779_v59 }
 0x225   : > { %2469 = vmatpush2.bf16.msra.mxu0 %v4782_v61  ;;  %2401 = vmatprep.subr.bf16.mxu1 %v4787_v63 }
 0x226   : > { %2470 = vmatprep.subr.bf16.mxu0 %v4790_v1 }
 0x228   : > { %2402 = vmatpush2.bf16.msra.mxu1 %v4785_v0  ;;  %v4809_v0 = vld [vmem:[%s6300_s4 + $0x220] ss:$8 sps:$4 sm:$0xff]  }
 0x229   : > { %2471 = vmatpush2.bf16.msra.mxu0 %v4788_v2  ;;  %2513 = vmatprep.subr.bf16.mxu1 %v4793_v3 }
 0x22a   : > { %2472 = vmatprep.subr.bf16.mxu0 %v4796_v4  ;;  %v4814_v4 = vld [vmem:[%s6300_s4 + $0x214] ss:$8 sps:$4 sm:$0xff]  }
 0x22d   : > { %2473 = vmatpush2.bf16.msra.mxu0 %v4794_v5 }
 0x2a9   : > { %v1655_v6 = vpop.f32.mrf.mxu1 }
 0x2ab   : > { %v1657_v7 = vpop.f32.mrf.mxu1 }
 0x2ad   : > { %v1659_v11 = vpop.f32.mrf.mxu1 }
 0x2ae   : > { %v1726_v8 = vpop.f32.mrf.mxu0 }
 0x2af   : > { %v1727_v10 = vadd.f32 %v1726_v8, %v1655_v6  ;;  %v1661_v18 = vpop.f32.mrf.mxu1 }
 0x2b0   : > { %v1728_v12 = vpop.f32.mrf.mxu0 }
 0x2b1   : > { %v1729_v13 = vadd.f32 %v1728_v12, %v1657_v7  ;;  %v1763_v14 = vmax.f32 %v1727_v10, 0.0  ;;  %v4812_v12 = vld [vmem:[%s6300_s4 + $0x210] ss:$8 sps:$4 sm:$0xff]  }
 0x2b2   : > { %v1730_v15 = vpop.f32.mrf.mxu0 }
 0x2b3   : > { %v1764_v16 = vmax.f32 %v1729_v13, 0.0  ;;  %v1731_v17 = vadd.f32 %v1730_v15, %v1659_v11  ;;  %v1777_v23 = vpack.c.bf16 %v1763_v14, %v5026_v62 }
 0x2b4   : > { %v1732_v19 = vpop.f32.mrf.mxu0 }
 0x2b5   : > { %v1778_v20 = vpack.c.bf16 %v1764_v16, %v5026_v62  ;;  %v1733_v21 = vadd.f32 %v1732_v19, %v1661_v18  ;;  %v1765_v24 = vmax.f32 %v1731_v17, 0.0 }
 0x2b7   : > { %v1766_v26 = vmax.f32 %v1733_v21, 0.0  ;;  %2403 = vmatprep.mubr.bf16.mxu1 %v1778_v20  ;;  %v1779_v30 = vpack.c.bf16 %v1765_v24, %v1763_v14 }
 0x2b8   : > { %2404 = vmatmul.mubr.bf16.vlgmr.msra.gmra.mxu1 %v1777_v23  ;;  %v4815_v23 = vld [vmem:[%s6300_s4 + $0x200] ss:$8 sps:$4 sm:$0xff]  }
 0x2b9   : > { %v1780_v27 = vpack.c.bf16 %v1766_v26, %v1764_v16  ;;  %2514 = vmatpush1.bf16.msra.mxu1 %v4791_v22  ;;  %v1665_v28 = vpop.f32.mrf.mxu1  ;;  %v4817_v16 = vld [vmem:[%s6300_s4 + $0x204] ss:$8 sps:$4 sm:$0xff]  }
 0x2ba   : > { %2515 = vmatprep.subr.bf16.mxu1 %v4799_v25 }
 0x2bb   : > { %v1667_v32 = vpop.f32.mrf.mxu1  ;;  %2474 = vmatprep.mubr.bf16.mxu0 %v1780_v27  ;;  %v4820_v27 = vld [vmem:[%s6300_s4 + $0x2f4] ss:$8 sps:$4 sm:$0xff]  }
 0x2bc   : > { %2475 = vmatmul.mubr.bf16.vlgmr.msra.gmra.mxu0 %v1779_v30 }
 0x2bd   : > { %2516 = vmatpush1.bf16.msra.mxu1 %v4797_v29  ;;  %v1669_v33 = vpop.f32.mrf.mxu1 }
 0x2be   : > { %v1736_v36 = vpop.f32.mrf.mxu0  ;;  %2517 = vmatprep.subr.bf16.mxu1 %v4802_v31 }
 0x2bf   : > { %v1737_v38 = vadd.f32 %v1736_v36, %v1665_v28  ;;  %v1671_v39 = vpop.f32.mrf.mxu1  ;;  %v4823_v36 = vld [vmem:[%s6300_s4 + $0x2e4] ss:$8 sps:$4 sm:$0xff]  }
 0x2c0   : > { %v1738_v9 = vpop.f32.mrf.mxu0 }
 0x2c1   : > { %v1739_v40 = vadd.f32 %v1738_v9, %v1667_v32  ;;  %2518 = vmatpush1.bf16.msra.mxu1 %v4800_v34  ;;  %v1767_v42 = vmax.f32 %v1737_v38, 0.0  ;;  %v4818_v32 = vld [vmem:[%s6300_s4 + $0x2f0] ss:$8 sps:$4 sm:$0xff]   ;;  %v4826_v9 = vld [vmem:[%s6300_s4 + $0x2d4] ss:$8 sps:$4 sm:$0xff]  }
 0x2c2   : > { %v1675_v43 = vpop.f32.mrf.mxu1  ;;  %v1740_v44 = vpop.f32.mrf.mxu0  ;;  %2519 = vmatprep.subr.bf16.mxu1 %v4805_v37 }
 0x2c3   : > { %v1768_v46 = vmax.f32 %v1739_v40, 0.0  ;;  %v1741_v47 = vadd.f32 %v1740_v44, %v1669_v33  ;;  %v5703_v53 = vpack.c.bf16 %v1767_v42, %v1765_v24  ;;  %v4832_v44 = vld [vmem:[%s6300_s4 + $0x2b4] ss:$8 sps:$4 sm:$0xff]  }
 0x2c4   : > { %v1677_v48 = vpop.f32.mrf.mxu1  ;;  %v1742_v49 = vpop.f32.mrf.mxu0 }
 0x2c5   : > { %v5698_v50 = vpack.c.bf16 %v1768_v46, %v1766_v26  ;;  %v1743_v51 = vadd.f32 %v1742_v49, %v1671_v39  ;;  %2520 = vmatpush1.bf16.msra.mxu1 %v4803_v41  ;;  %v1769_v54 = vmax.f32 %v1741_v47, 0.0  ;;  %v4821_v39 = vld [vmem:[%s6300_s4 + $0x2e0] ss:$8 sps:$4 sm:$0xff]   ;;  %v4824_v41 = vld [vmem:[%s6300_s4 + $0x2d0] ss:$8 sps:$4 sm:$0xff]  }
 0x2c6   : > { %v1679_v55 = vpop.f32.mrf.mxu1  ;;  %2521 = vmatprep.subr.bf16.mxu1 %v4808_v45  ;;  %v4830_v45 = vld [vmem:[%s6300_s4 + $0x2b0] ss:$8 sps:$4 sm:$0xff]   ;;  %v4833_v47 = vld [vmem:[%s6300_s4 + $0x2a0] ss:$8 sps:$4 sm:$0xff]  }
 0x2c7   : > { %v1770_v57 = vmax.f32 %v1743_v51, 0.0  ;;  %v1746_v58 = vpop.f32.mrf.mxu0  ;;  %2413 = vmatprep.mubr.bf16.mxu1 %v5698_v50  ;;  %v1783_v1 = vpack.c.bf16 %v1769_v54, %v1767_v42  ;;  %v4829_v42 = vld [vmem:[%s6300_s4 + $0x2c4] ss:$8 sps:$4 sm:$0xff]   ;;  %v4836_v49 = vld [vmem:[%s6300_s4 + $0x290] ss:$8 sps:$4 sm:$0xff]  }
 0x2c8   : > { %v1747_v59 = vadd.f32 %v1746_v58, %v1675_v43  ;;  %v1681_v60 = vpop.f32.mrf.mxu1  ;;  %2414 = vmatmul.mubr.bf16.gmra.mxu1 %v5703_v53  ;;  %v4827_v43 = vld [vmem:[%s6300_s4 + $0x2c0] ss:$8 sps:$4 sm:$0xff]  }
 0x2c9   : > { %v1784_v61 = vpack.c.bf16 %v1770_v57, %v1768_v46  ;;  %2522 = vmatpush1.bf16.msra.mxu1 %v4806_v52  ;;  %v1748_v63 = vpop.f32.mrf.mxu0  ;;  %v4835_v46 = vld [vmem:[%s6300_s4 + $0x2a4] ss:$8 sps:$4 sm:$0xff]   ;;  %v4839_v51 = vld [vmem:[%s6300_s4 + $0x280] ss:$8 sps:$4 sm:$0xff]  }
 0x2ca   : > { %v1749_v2 = vadd.f32 %v1748_v63, %v1677_v48  ;;  %v1685_v3 = vpop.f32.mrf.mxu1  ;;  %2523 = vmatprep.subr.bf16.mxu1 %v4811_v56  ;;  %v1771_v6 = vmax.f32 %v1747_v59, 0.0  ;;  %v4838_v48 = vld [vmem:[%s6300_s4 + $0x294] ss:$8 sps:$4 sm:$0xff]   ;;  %v4846_v58 = vld [vmem:[%s6301_s5 + $0x68] sm:$0xff]  }
 0x2cb   : > { %v1750_v5 = vpop.f32.mrf.mxu0  ;;  %2484 = vmatprep.mubr.bf16.mxu0 %v1784_v61  ;;  %v4844_v56 = vld [vmem:[%s6301_s5 + $0x70] sm:$0xff]   ;;  %v4848_v59 = vld [vmem:[%s6301_s5 + $0x178] sm:$0xff]   ;;  %v4847_v63 = vld [vmem:[%s6301_s5 + $0x28] sm:$0xff]  }
 0x2cc   : > { %v1772_v7 = vmax.f32 %v1749_v2, 0.0  ;;  %v1751_v8 = vadd.f32 %v1750_v5, %v1679_v55  ;;  %v1687_v10 = vpop.f32.mrf.mxu1  ;;  %2485 = vmatmul.mubr.bf16.gmra.mxu0 %v1783_v1  ;;  %v5726_v19 = vpack.c.bf16 %v1771_v6, %v1769_v54  ;;  %v4842_v55 = vld [vmem:[%s6301_s5 + $0x78] sm:$0xff]   ;;  %v4852_v61 = vld [vmem:[%s6301_s5 + $0x170] sm:$0xff]   ;;  %v4850_v1 = vld [vmem:[%s6301_s5 + $0x60] sm:$0xff]  }
 0x2cd   : > { %2524 = vmatpush1.bf16.msra.mxu1 %v4809_v0  ;;  %v1752_v11 = vpop.f32.mrf.mxu0  ;;  %4364 = vmatprep.subr.bf16.mxu0 %v4842_v55  ;;  %v4853_v0 = vld [vmem:[%s6301_s5 + $0x130] sm:$0xff]   ;;  %v4856_v2 = vld [vmem:[%s6301_s5 + $0x168] sm:$0xff]   ;;  %v4854_v5 = vld [vmem:[%s6301_s5 + $0x58] sm:$0xff]  }
 0x2ce   : > { %v5719_v13 = vpack.c.bf16 %v1772_v7, %v1770_v57  ;;  %v1753_v14 = vadd.f32 %v1752_v11, %v1681_v60  ;;  %v1689_v15 = vpop.f32.mrf.mxu1  ;;  %2525 = vmatprep.subr.bf16.mxu1 %v4814_v4  ;;  %v5724_v17 = vmax.f32 %v1751_v8, 0.0  ;;  %v4845_v57 = vld [vmem:[%s6301_s5 + $0x30] sm:$0xff]   ;;  %v4849_v60 = vld [vmem:[%s6301_s5 + $0x138] sm:$0xff]   ;;  %v4857_v4 = vld [vmem:[%s6301_s5 + $0x128] sm:$0xff]  }
 0x2cf   : > { %v1756_v18 = vpop.f32.mrf.mxu0  ;;  %v4861_v8 = vld [vmem:[%s6301_s5 + $0x120] sm:$0xff]   ;;  %v4859_v11 = vld [vmem:[%s6301_s5 + $0x10] sm:$0xff]   ;;  %v4865_v15 = vld [vmem:[%s6301_s5 + $0x118] sm:$0xff]  }
 0x2d0   : > { %v5728_v20 = vmax.f32 %v1753_v14, 0.0  ;;  %v1690_v21 = vpop.f32.mrf.mxu1  ;;  %2423 = vmatprep.mubr.bf16.mxu1 %v5719_v13  ;;  %v1757_v28 = vadd.f32 %v1756_v18, %v1685_v3  ;;  %v1787_v29 = vpack.c.bf16 %v5724_v17, %v1771_v6  ;;  %v1791_v38 = vpack.c.bf16 %v5724_v17, %v5724_v17  ;;  %v4851_v3 = vld [vmem:[%s6301_s5 + $0x20] sm:$0xff]   ;;  %v4863_v14 = vld [vmem:[%s6301_s5 + $0x8] sm:$0xff]  }
 0x2d1   : > { %2526 = vmatpush1.bf16.msra.mxu1 %v4812_v12  ;;  %v1758_v22 = vpop.f32.mrf.mxu0  ;;  %v4860_v6 = vld [vmem:[%s6301_s5 + $0x160] sm:$0xff]   ;;  %v4862_v12 = vld [vmem:[%s6301_s5 + $0x48] sm:$0xff]  }
 0x2d2   : > { %v1759_v24 = vadd.f32 %v1758_v22, %v1687_v10  ;;  %2424 = vmatmul.mubr.bf16.gmra.mxu1 %v5726_v19  ;;  %2527 = vmatprep.subr.bf16.mxu1 %v4817_v16  ;;  %v1792_v25 = vpack.c.bf16 %v5728_v20, %v5728_v20  ;;  %v1788_v26 = vpack.c.bf16 %v5728_v20, %v1772_v7  ;;  %v1775_v37 = vmax.f32 %v1757_v28, 0.0  ;;  %v4855_v7 = vld [vmem:[%s6301_s5 + $0x18] sm:$0xff]   ;;  %v4858_v10 = vld [vmem:[%s6301_s5 + $0x50] sm:$0xff]   ;;  %v4866_v16 = vld [vmem:[%s6301_s5 + $0x40] sm:$0xff]  }
 0x2d3   : > { %v1760_v30 = vpop.f32.mrf.mxu0  ;;  %v4867_v18 = vld [vmem:[%s6301_s5] sm:$0xff]   ;;  %v4872_v21 = vld [vmem:[%s6301_s5 + $0x148] sm:$0xff]  }
 0x2d4   : > { %v1776_v31 = vmax.f32 %v1759_v24, 0.0  ;;  %2433 = vmatprep.mubr.bf16.mxu1 %v1792_v25  ;;  %2494 = vmatprep.mubr.bf16.mxu0 %v1788_v26  ;;  %v1793_v40 = vpack.c.bf16 %v1775_v37, %v1775_v37  ;;  %v1789_v54 = vpack.c.bf16 %v1775_v37, %v5724_v17  ;;  %v4868_v17 = vld [vmem:[%s6301_s5 + $0x150] sm:$0xff]   ;;  %v4873_v22 = vld [vmem:[%s6301_s5 + $0x108] sm:$0xff]   ;;  %v4877_v24 = vld [vmem:[%s6301_s5 + $0x100] sm:$0xff]  }
 0x2d5   : > { %2528 = vmatpush1.bf16.msra.mxu1 %v4815_v23  ;;  %2495 = vmatmul.mubr.bf16.gmra.mxu0 %v1787_v29  ;;  %v1761_v33 = vpop.f32.mrf.mxu0  ;;  %v4876_v23 = vld [vmem:[%s6301_s5 + $0x140] sm:$0xff]  }
 0x2d6   : > { %v1794_v34 = vpack.c.bf16 %v1776_v31, %v1776_v31  ;;  %2529 = vmatprep.subr.bf16.mxu1 %v4820_v27  ;;  %v1790_v52 = vpack.c.bf16 %v1776_v31, %v5728_v20  ;;  %v4870_v20 = vld [vmem:[%s6301_s5 + $0xf8] sm:$0xff]  }
 0x2d8   : > { %2504 = vmatprep.mubr.bf16.mxu0 %v1794_v34 }
 0x2d9   : > { %2530 = vmatpush2.bf16.msra.mxu1 %v4818_v32 }
 0x2da   : > { %2434 = vmatmul.mubr.bf16.gmra.mxu1 %v1791_v38  ;;  %2531 = vmatprep.subr.bf16.mxu1 %v4823_v36 }
 0x2db   : > { %2545 = vmatprep.mubr.bf16.mxu1 %v5698_v50  ;;  %v4841_v50 = vld [vmem:[%s6300_s4 + $0x284] ss:$8 sps:$4 sm:$0xff]  }
 0x2dd   : > { %2532 = vmatpush2.bf16.msra.mxu1 %v4821_v39  ;;  %2505 = vmatmul.mubr.bf16.gmra.mxu0 %v1793_v40 }
 0x2de   : > { %2533 = vmatprep.subr.bf16.mxu1 %v4826_v9 }
 0x2e1   : > { %2534 = vmatpush2.bf16.msra.mxu1 %v4824_v41 }
 0x2e2   : > { %2535 = vmatprep.subr.bf16.mxu1 %v4829_v42 }
 0x2e5   : > { %2536 = vmatpush2.bf16.msra.mxu1 %v4827_v43 }
 0x2e6   : > { %2537 = vmatprep.subr.bf16.mxu1 %v4832_v44 }
 0x2e9   : > { %2538 = vmatpush2.bf16.msra.mxu1 %v4830_v45 }
 0x2ea   : > { %2539 = vmatprep.subr.bf16.mxu1 %v4835_v46 }
 0x2ed   : > { %2540 = vmatpush2.bf16.msra.mxu1 %v4833_v47 }
 0x2ee   : > { %2541 = vmatprep.subr.bf16.mxu1 %v4838_v48 }
 0x2f1   : > { %2542 = vmatpush2.bf16.msra.mxu1 %v4836_v49 }
 0x2f2   : > { %2543 = vmatprep.subr.bf16.mxu1 %v4841_v50 }
 0x2f5   : > { %2544 = vmatpush2.bf16.msra.mxu1 %v4839_v51 }
 0x2f6   : > { %4444 = vmatprep.subr.bf16.mxu1 %v4848_v59 }
 0x2f8   : > { %2546 = vmatmul.mubr.bf16.vlgmr.msra.gmra.mxu1 %v5703_v53  ;;  %v4843_v53 = vld [vmem:[%s6301_s5 + $0x38] sm:$0xff]  }
 0x2f9   : > { %2555 = vmatprep.mubr.bf16.mxu1 %v5719_v13  ;;  %4365 = vmatpush3.bf16.msra.mxu0 %v4843_v53  ;;  %v4864_v13 = vld [vmem:[%s6301_s5 + $0x158] sm:$0xff]  }
 0x2fa   : > { %4366 = vmatprep.subr.bf16.mxu0 %v4844_v56  ;;  %4445 = vmatpush3.bf16.msra.mxu1 %v4849_v60 }
 0x2fb   : > { %4446 = vmatprep.subr.bf16.mxu1 %v4852_v61 }
 0x2fd   : > { %4367 = vmatpush3.bf16.msra.mxu0 %v4845_v57 }
 0x2fe   : > { %4368 = vmatprep.subr.bf16.mxu0 %v4846_v58  ;;  %4447 = vmatpush3.bf16.msra.mxu1 %v4853_v0 }
 0x2ff   : > { %4448 = vmatprep.subr.bf16.mxu1 %v4856_v2 }
 0x300   : > { %2556 = vmatmul.mubr.bf16.gmra.mxu1 %v5726_v19  ;;  %v4869_v19 = vld [vmem:[%s6301_s5 + $0x110] sm:$0xff]  }
 0x301   : > { %2565 = vmatprep.mubr.bf16.mxu1 %v1790_v52  ;;  %4369 = vmatpush3.bf16.msra.mxu0 %v4847_v63 }
 0x302   : > { %4370 = vmatprep.subr.bf16.mxu0 %v4850_v1  ;;  %4449 = vmatpush3.bf16.msra.mxu1 %v4857_v4 }
 0x303   : > { %4450 = vmatprep.subr.bf16.mxu1 %v4860_v6 }
 0x305   : > { %4371 = vmatpush3.bf16.msra.mxu0 %v4851_v3 }
 0x306   : > { %4372 = vmatprep.subr.bf16.mxu0 %v4854_v5  ;;  %4451 = vmatpush3.bf16.msra.mxu1 %v4861_v8 }
 0x307   : > { %4452 = vmatprep.subr.bf16.mxu1 %v4864_v13 }
 0x308   : > { %2566 = vmatmul.mubr.bf16.gmra.mxu1 %v1789_v54 }
 0x309   : > { %2575 = vmatprep.mubr.bf16.mxu1 %v5027_v35  ;;  %4373 = vmatpush3.bf16.msra.mxu0 %v4855_v7  ;;  %v4871_v7 = vld [vmem:[%s6301_s5 + $0xb8] sm:$0xff]  }
 0x30a   : > { %4374 = vmatprep.subr.bf16.mxu0 %v4858_v10  ;;  %4453 = vmatpush3.bf16.msra.mxu1 %v4865_v15 }
 0x30b   : > { %4454 = vmatprep.subr.bf16.mxu1 %v4868_v17 }
 0x30d   : > { %4375 = vmatpush3.bf16.msra.mxu0 %v4859_v11 }
 0x30e   : > { %4376 = vmatprep.subr.bf16.mxu0 %v4862_v12  ;;  %4455 = vmatpush3.bf16.msra.mxu1 %v4869_v19  ;;  %v4874_v12 = vld [vmem:[%s6301_s5 + $0xf0] sm:$0xff]  }
 0x30f   : > { %4456 = vmatprep.subr.bf16.mxu1 %v4872_v21  ;;  %v4878_v21 = vld [vmem:[%s6301_s5 + $0xe8] sm:$0xff]  }
 0x310   : > { %2576 = vmatmul.mubr.bf16.gmra.mxu1 %v5027_v35 }
 0x311   : > { %4377 = vmatpush3.bf16.msra.mxu0 %v4863_v14 }
 0x312   : > { %4378 = vmatprep.subr.bf16.mxu0 %v4866_v16  ;;  %4457 = vmatpush3.bf16.msra.mxu1 %v4873_v22 }
 0x313   : > { %4458 = vmatprep.subr.bf16.mxu1 %v4876_v23 }
 0x315   : > { %4379 = vmatpush3.bf16.msra.mxu0 %v4867_v18 }
 0x316   : > { %4404 = vmatprep.subr.bf16.mxu0 %v4870_v20  ;;  %4459 = vmatpush3.bf16.msra.mxu1 %v4877_v24 }
 0x378   : > { %v2405_v25 = vpop.f32.mrf.mxu1 }
 0x37a   : > { %v2407_v26 = vpop.f32.mrf.mxu1 }
 0x37c   : > { %v2476_v27 = vpop.f32.mrf.mxu0  ;;  %v2409_v28 = vpop.f32.mrf.mxu1 }
 0x37d   : > { %v2477_v57 = vadd.f32 %v2476_v27, %v2405_v25 }
 0x37e   : > { %v2478_v29 = vpop.f32.mrf.mxu0  ;;  %v2411_v30 = vpop.f32.mrf.mxu1 }
 0x37f   : > { %v2479_v59 = vadd.f32 %v2478_v29, %v2407_v26  ;;  %v4879_v29 = vld [vmem:[%s6301_s5 + $0xa8] sm:$0xff]  }
 0x380   : > { %v2480_v31 = vpop.f32.mrf.mxu0 }
 0x381   : > { %v2481_v8 = vadd.f32 %v2480_v31, %v2409_v28 }
 0x382   : > { %v2482_v33 = vpop.f32.mrf.mxu0 }
 0x383   : > { %v2483_v4 = vadd.f32 %v2482_v33, %v2411_v30  ;;  %v4880_v33 = vld [vmem:[%s6301_s5 + $0xe0] sm:$0xff]  }
 0x388   : > { %v2415_v32 = vpop.f32.mrf.mxu1 }
 0x38a   : > { %v2417_v34 = vpop.f32.mrf.mxu1 }
 0x38c   : > { %v5896_v36 = vpop.f32.mrf.mxu1  ;;  %v2486_v37 = vpop.f32.mrf.mxu0 }
 0x38d   : > { %v2487_v5 = vadd.f32 %v2486_v37, %v2415_v32 }
 0x38e   : > { %v2421_v38 = vpop.f32.mrf.mxu1  ;;  %v2488_v39 = vpop.f32.mrf.mxu0 }
 0x38f   : > { %v2489_v13 = vadd.f32 %v2488_v39, %v2417_v34 }
 0x390   : > { %v2490_v9 = vpop.f32.mrf.mxu0 }
 0x391   : > { %v2491_v30 = vadd.f32 %v2490_v9, %v5896_v36 }
 0x392   : > { %v2425_v40 = vpop.f32.mrf.mxu1  ;;  %v2492_v41 = vpop.f32.mrf.mxu0 }
 0x393   : > { %v2493_v26 = vadd.f32 %v2492_v41, %v2421_v38 }
 0x394   : > { %v2427_v42 = vpop.f32.mrf.mxu1 }
 0x395   : > { %v2496_v43 = vpop.f32.mrf.mxu0 }
 0x396   : > { %v5898_v44 = vpop.f32.mrf.mxu1  ;;  %v2497_v27 = vadd.f32 %v2496_v43, %v2425_v40  ;;  %v4881_v40 = vld [vmem:[%s6301_s5 + $0xa0] sm:$0xff]   ;;  %v4882_v43 = vld [vmem:[%s6301_s5 + $0xd8] sm:$0xff]  }
 0x397   : > { %v2498_v45 = vpop.f32.mrf.mxu0 }
 0x398   : > { %v5900_v46 = vpop.f32.mrf.mxu1  ;;  %v2499_v34 = vadd.f32 %v2498_v45, %v2427_v42 }
 0x399   : > { %v5902_v47 = vpop.f32.mrf.mxu0 }
 0x39a   : > { %v5904_v48 = vpop.f32.mrf.mxu1 }
 0x39b   : > { %v5906_v49 = vpop.f32.mrf.mxu0 }
 0x39c   : > { %v5908_v50 = vpop.f32.mrf.mxu1  ;;  %v2503_v45 = vadd.f32 %v5906_v49, %v5900_v46  ;;  %v4883_v46 = vld [vmem:[%s6301_s5 + $0x98] sm:$0xff]  }
 0x39d   : > { %v5910_v51 = vpop.f32.mrf.mxu0 }
 0x39e   : > { %v2439_v52 = vpop.f32.mrf.mxu1 }
 0x39f   : > { %v5912_v54 = vpop.f32.mrf.mxu0 }
 0x3a0   : > { %v2440_v55 = vpop.f32.mrf.mxu1 }
 0x3a1   : > { %v2510_v53 = vpop.f32.mrf.mxu0 }
 0x3a2   : > { %v2501_v53 = vadd.f32 %v5902_v47, %v5898_v44  ;;  %v4884_v44 = vld [vmem:[%s6301_s5 + $0xd0] sm:$0xff]   ;;  %v2509_v47 = vadd.f32 %v5912_v54, %v5908_v50  ;;  %v4886_v50 = vld [vmem:[%s6301_s5 + $0xc8] sm:$0xff]  }
 0x3a3   : > { %v2511_v56 = vpop.f32.mrf.mxu0 }
 0x3b8   : > { %v2547_v58 = vpop.f32.mrf.mxu1 }
 0x3b9   : > { %v5914_v60 = vadd.f32 %v2547_v58, %v2477_v57  ;;  %v2507_v58 = vadd.f32 %v5910_v51, %v5904_v48 }
 0x3ba   : > { %v2549_v61 = vpop.f32.mrf.mxu1 }
 0x3bb   : > { %v5916_v63 = vadd.f32 %v2549_v61, %v2479_v59  ;;  %v2584_v0 = vmax.f32 %v5914_v60, 0.0 }
 0x3bc   : > { %v2551_v1 = vpop.f32.mrf.mxu1 }
 0x3bd   : > { %v2585_v2 = vmax.f32 %v5916_v63, 0.0  ;;  %v2598_v10 = vpack.c.bf16 %v2584_v0, %v5026_v62  ;;  %v5936_v16 = vadd.f32 %v2551_v1, %v2481_v8 }
 0x3be   : > { %v2553_v3 = vpop.f32.mrf.mxu1 }
 0x3bf   : > { %v2599_v6 = vpack.c.bf16 %v2585_v2, %v5026_v62  ;;  %v5932_v14 = vadd.f32 %v2553_v3, %v2483_v4  ;;  %v4875_v62 = vld [vmem:[%s6301_s5 + $0xb0] sm:$0xff]   ;;  %v2586_v24 = vmax.f32 %v5936_v16, 0.0 }
 0x3c0   : > { %v2557_v11 = vpop.f32.mrf.mxu1  ;;  %v4892_v16 = vld [vmem:[%s6302_s6 + $0x74] ss:$8 sps:$4 sm:$0xff]  }
 0x3c1   : > { %v5934_v15 = vadd.f32 %v2557_v11, %v2487_v5  ;;  %3032 = vmatprep.mubr.bf16.mxu0 %v2599_v6  ;;  %v2587_v22 = vmax.f32 %v5932_v14, 0.0  ;;  %v2600_v63 = vpack.c.bf16 %v2586_v24, %v2584_v0 }
 0x3c2   : > { %v2559_v17 = vpop.f32.mrf.mxu1  ;;  %3033 = vmatmul.mubr.bf16.vlgmr.msra.gmra.mxu0 %v2598_v10 }
 0x3c3   : > { %v5938_v18 = vadd.f32 %v2559_v17, %v2489_v13  ;;  %4405 = vmatpush3.bf16.msra.mxu0 %v4871_v7  ;;  %v2588_v19 = vmax.f32 %v5934_v15, 0.0  ;;  %v4885_v7 = vld [vmem:[%s6301_s5 + $0x90] sm:$0xff]   ;;  %v4887_v17 = vld [vmem:[%s6301_s5 + $0x88] sm:$0xff]  }
 0x3c4   : > { %v2561_v20 = vpop.f32.mrf.mxu1  ;;  %4406 = vmatprep.subr.bf16.mxu0 %v4874_v12  ;;  %v4895_v15 = vld [vmem:[%s6302_s6 + $0x64] ss:$8 sps:$4 sm:$0xff]  }
 0x3c5   : > { %v2589_v23 = vmax.f32 %v5938_v18, 0.0  ;;  %v2602_v31 = vpack.c.bf16 %v2588_v19, %v2586_v24  ;;  %v5969_v39 = vadd.f32 %v2561_v20, %v2491_v30  ;;  %v4893_v18 = vld [vmem:[%s6302_s6 + $0x60] ss:$8 sps:$4 sm:$0xff]   ;;  %v4901_v24 = vld [vmem:[%s6302_s6 + $0x44] ss:$8 sps:$4 sm:$0xff]  }
 0x3c6   : > { %v2563_v25 = vpop.f32.mrf.mxu1  ;;  %v4902_v30 = vld [vmem:[%s6302_s6 + $0x30] ss:$8 sps:$4 sm:$0xff]  }
 0x3c7   : > { %v2603_v28 = vpack.c.bf16 %v2589_v23, %v2587_v22  ;;  %4407 = vmatpush3.bf16.msra.mxu0 %v4875_v62  ;;  %v5965_v37 = vadd.f32 %v2563_v25, %v2493_v26  ;;  %v2590_v56 = vmax.f32 %v5969_v39, 0.0  ;;  %v2601_v25 = vpack.c.bf16 %v2587_v22, %v2585_v2  ;;  %v4889_v26 = vld [vmem:[%s6301_s5 + $0x80] sm:$0xff]   ;;  %v4916_v39 = vld [vmem:[%s6302_s6 + $0xf4] ss:$8 sps:$4 sm:$0xff]  }
 0x3c8   : > { %v2567_v32 = vpop.f32.mrf.mxu1  ;;  %4408 = vmatprep.subr.bf16.mxu0 %v4878_v21  ;;  %v4888_v21 = vld [vmem:[%s6301_s5 + $0xc0] sm:$0xff]  }
 0x3c9   : > { %v5967_v38 = vadd.f32 %v2567_v32, %v2497_v27  ;;  %3040 = vmatprep.mubr.bf16.mxu0 %v2603_v28  ;;  %3160 = vmatprep.mubr.bf16.mxu1 %v2603_v28  ;;  %v2591_v52 = vmax.f32 %v5965_v37, 0.0  ;;  %v2604_v14 = vpack.c.bf16 %v2590_v56, %v2588_v19  ;;  %v4898_v19 = vld [vmem:[%s6302_s6 + $0x54] ss:$8 sps:$4 sm:$0xff]   ;;  %v4899_v28 = vld [vmem:[%s6302_s6 + $0x40] ss:$8 sps:$4 sm:$0xff]  }
 0x3ca   : > { %v2569_v36 = vpop.f32.mrf.mxu1  ;;  %3041 = vmatmul.mubr.bf16.gmra.mxu0 %v2602_v31  ;;  %3161 = vmatmul.mubr.bf16.vlgmr.msra.gmra.mxu1 %v2602_v31  ;;  %v4907_v31 = vld [vmem:[%s6302_s6 + $0x24] ss:$8 sps:$4 sm:$0xff]   ;;  %v4905_v32 = vld [vmem:[%s6302_s6 + $0x20] ss:$8 sps:$4 sm:$0xff]  }
 0x3cb   : > { %v5971_v9 = vadd.f32 %v2569_v36, %v2499_v34  ;;  %4409 = vmatpush3.bf16.msra.mxu0 %v4879_v29  ;;  %v2592_v41 = vmax.f32 %v5967_v38, 0.0  ;;  %v2605_v2 = vpack.c.bf16 %v2591_v52, %v2589_v23  ;;  %v4896_v23 = vld [vmem:[%s6302_s6 + $0x50] ss:$8 sps:$4 sm:$0xff]   ;;  %v4904_v29 = vld [vmem:[%s6302_s6 + $0x34] ss:$8 sps:$4 sm:$0xff]  }
 0x3cc   : > { %v2571_v42 = vpop.f32.mrf.mxu1  ;;  %4410 = vmatprep.subr.bf16.mxu0 %v4880_v33  ;;  %v4910_v33 = vld [vmem:[%s6302_s6 + $0x14] ss:$8 sps:$4 sm:$0xff]   ;;  %v4908_v34 = vld [vmem:[%s6302_s6 + $0x10] ss:$8 sps:$4 sm:$0xff]   ;;  %v4913_v37 = vld [vmem:[%s6302_s6 + $0x4] ss:$8 sps:$4 sm:$0xff]  }
 0x3cd   : > { %v2593_v55 = vmax.f32 %v5971_v9, 0.0  ;;  %v2606_v49 = vpack.c.bf16 %v2592_v41, %v2590_v56  ;;  %v2572_v1 = vadd.f32 %v2571_v42, %v2501_v53  ;;  %v4911_v38 = vld [vmem:[%s6302_s6] ss:$8 sps:$4 sm:$0xff]   ;;  %v4914_v36 = vld [vmem:[%s6302_s6 + $0xf0] ss:$8 sps:$4 sm:$0xff]  }
 0x3ce   : > { %v2573_v57 = vpop.f32.mrf.mxu1  ;;  %v4919_v9 = vld [vmem:[%s6302_s6 + $0xe4] ss:$8 sps:$4 sm:$0xff]   ;;  %v4920_v42 = vld [vmem:[%s6302_s6 + $0xd0] ss:$8 sps:$4 sm:$0xff]   ;;  %v4929_v56 = vld [vmem:[%s6302_s6 + $0xa0] ss:$8 sps:$4 sm:$0xff]  }
 0x3cf   : > { %v2607_v59 = vpack.c.bf16 %v2593_v55, %v2591_v52  ;;  %v2574_v61 = vadd.f32 %v2573_v57, %v2503_v45  ;;  %4411 = vmatpush3.bf16.msra.mxu0 %v4881_v40  ;;  %v2594_v8 = vmax.f32 %v2572_v1, 0.0  ;;  %v4917_v40 = vld [vmem:[%s6302_s6 + $0xe0] ss:$8 sps:$4 sm:$0xff]   ;;  %v4928_v52 = vld [vmem:[%s6302_s6 + $0xb4] ss:$8 sps:$4 sm:$0xff]  }
 0x3d0   : > { %v2577_v3 = vpop.f32.mrf.mxu1  ;;  %4412 = vmatprep.subr.bf16.mxu0 %v4882_v43  ;;  %v4925_v43 = vld [vmem:[%s6302_s6 + $0xc4] ss:$8 sps:$4 sm:$0xff]   ;;  %v4923_v45 = vld [vmem:[%s6302_s6 + $0xc0] ss:$8 sps:$4 sm:$0xff]   ;;  %v4932_v57 = vld [vmem:[%s6302_s6 + $0x90] ss:$8 sps:$4 sm:$0xff]  }
 0x3d1   : > { %v2595_v48 = vmax.f32 %v2574_v61, 0.0  ;;  %v2578_v51 = vadd.f32 %v2577_v3, %v2507_v58  ;;  %3048 = vmatprep.mubr.bf16.mxu0 %v2607_v59  ;;  %3168 = vmatprep.mubr.bf16.mxu1 %v2607_v59  ;;  %v2612_v20 = vpack.c.bf16 %v2594_v8, %v2594_v8  ;;  %v2608_v27 = vpack.c.bf16 %v2594_v8, %v2592_v41  ;;  %v4922_v41 = vld [vmem:[%s6302_s6 + $0xd4] ss:$8 sps:$4 sm:$0xff]   ;;  %v4931_v53 = vld [vmem:[%s6302_s6 + $0xa4] ss:$8 sps:$4 sm:$0xff]  }
 0x3d2   : > { %v2579_v4 = vpop.f32.mrf.mxu1  ;;  %3049 = vmatmul.mubr.bf16.gmra.mxu0 %v2606_v49  ;;  %3169 = vmatmul.mubr.bf16.gmra.mxu1 %v2606_v49  ;;  %v4934_v58 = vld [vmem:[%s6302_s6 + $0x94] ss:$8 sps:$4 sm:$0xff]   ;;  %v4937_v59 = vld [vmem:[%s6302_s6 + $0x84] ss:$8 sps:$4 sm:$0xff]   ;;  %v4935_v61 = vld [vmem:[%s6302_s6 + $0x80] ss:$8 sps:$4 sm:$0xff]  }
 0x3d3   : > { %v2580_v5 = vadd.f32 %v2579_v4, %v2509_v47  ;;  %4413 = vmatpush3.bf16.msra.mxu0 %v4883_v46  ;;  %v2613_v6 = vpack.c.bf16 %v2595_v48, %v2595_v48  ;;  %v2596_v10 = vmax.f32 %v2578_v51, 0.0  ;;  %v2609_v22 = vpack.c.bf16 %v2595_v48, %v2593_v55  ;;  %v4926_v55 = vld [vmem:[%s6302_s6 + $0xb0] ss:$8 sps:$4 sm:$0xff]   ;;  %v4940_v49 = vld [vmem:[%s6304_s8 + $0x74] ss:$8 sps:$4 sm:$0xff]  }
 0x3d4   : > { %4414 = vmatprep.subr.bf16.mxu0 %v4884_v44  ;;  %v2581_v54 = vpop.f32.mrf.mxu1  ;;  %v4938_v46 = vld [vmem:[%s6304_s8 + $0x70] ss:$8 sps:$4 sm:$0xff]   ;;  %v4943_v1 = vld [vmem:[%s6304_s8 + $0x64] ss:$8 sps:$4 sm:$0xff]   ;;  %3664 = vmatprep.subr.bf16.mxu1 %v4940_v49  ;;  %v4941_v3 = vld [vmem:[%s6304_s8 + $0x60] ss:$8 sps:$4 sm:$0xff]  }
 0x3d5   : > { %v2597_v11 = vmax.f32 %v2580_v5, 0.0  ;;  %3056 = vmatprep.mubr.bf16.mxu0 %v2613_v6  ;;  %v2610_v62 = vpack.c.bf16 %v2596_v10, %v2594_v8  ;;  %v2614_v0 = vpack.c.bf16 %v2596_v10, %v2596_v10  ;;  %3665 = vmatpush1.bf16.msra.mxu1 %v4938_v46  ;;  %v4946_v44 = vld [vmem:[%s6304_s8 + $0x54] ss:$8 sps:$4 sm:$0xff]   ;;  %v4944_v47 = vld [vmem:[%s6304_s8 + $0x50] ss:$8 sps:$4 sm:$0xff]  }
 0x3d6   : > { %v2582_v12 = vpop.f32.mrf.mxu1  ;;  %3666 = vmatprep.subr.bf16.mxu1 %v4943_v1  ;;  %v4947_v51 = vld [vmem:[%s6304_s8 + $0x40] ss:$8 sps:$4 sm:$0xff]   ;;  %v4952_v4 = vld [vmem:[%s6304_s8 + $0x34] ss:$8 sps:$4 sm:$0xff]   ;;  %v4950_v5 = vld [vmem:[%s6304_s8 + $0x30] ss:$8 sps:$4 sm:$0xff]  }
 0x3d7   : > { %v2611_v13 = vpack.c.bf16 %v2597_v11, %v2595_v48  ;;  %4415 = vmatpush3.bf16.msra.mxu0 %v4885_v7  ;;  %v2615_v60 = vpack.c.bf16 %v2597_v11, %v2597_v11  ;;  %v4949_v48 = vld [vmem:[%s6304_s8 + $0x44] ss:$8 sps:$4 sm:$0xff]   ;;  %v4953_v7 = vld [vmem:[%s6304_s8 + $0x20] ss:$8 sps:$4 sm:$0xff]   ;;  %v4958_v8 = vld [vmem:[%s6304_s8 + $0x14] ss:$8 sps:$4 sm:$0xff]  }
 0x3d8   : > { %4416 = vmatprep.subr.bf16.mxu0 %v4886_v50  ;;  %v4955_v6 = vld [vmem:[%s6304_s8 + $0x24] ss:$8 sps:$4 sm:$0xff]   ;;  %v4956_v10 = vld [vmem:[%s6304_s8 + $0x10] ss:$8 sps:$4 sm:$0xff]   ;;  %v4959_v54 = vld [vmem:[%s6304_s8] ss:$8 sps:$4 sm:$0xff]  }
 0x3d9   : > { %3176 = vmatprep.mubr.bf16.mxu1 %v2611_v13  ;;  %3667 = vmatpush1.bf16.msra.mxu1 %v4941_v3  ;;  %v4961_v50 = vld [vmem:[%s6304_s8 + $0x4] ss:$8 sps:$4 sm:$0xff]   ;;  %v4964_v11 = vld [vmem:[%s6304_s8 + $0xf4] ss:$8 sps:$4 sm:$0xff]   ;;  %v4962_v12 = vld [vmem:[%s6304_s8 + $0xf0] ss:$8 sps:$4 sm:$0xff]  }
 0x3da   : > { %3057 = vmatmul.mubr.bf16.gmra.mxu0 %v2612_v20  ;;  %3177 = vmatmul.mubr.bf16.gmra.mxu1 %v2610_v62  ;;  %v4967_v13 = vld [vmem:[%s6304_s8 + $0xe4] ss:$8 sps:$4 sm:$0xff]   ;;  %v4970_v62 = vld [vmem:[%s6304_s8 + $0xd4] ss:$8 sps:$4 sm:$0xff]   ;;  %v4968_v20 = vld [vmem:[%s6304_s8 + $0xd0] ss:$8 sps:$4 sm:$0xff]  }
 0x3db   : > { %4417 = vmatpush3.bf16.msra.mxu0 %v4887_v17  ;;  %3096 = vmatprep.mubr.bf16.mxu0 %v2601_v25  ;;  %v4965_v17 = vld [vmem:[%s6304_s8 + $0xe0] ss:$8 sps:$4 sm:$0xff]  }
 0x3dc   : > { %4418 = vmatprep.subr.bf16.mxu0 %v4888_v21  ;;  %3184 = vmatprep.mubr.bf16.mxu1 %v5027_v35  ;;  %v4973_v21 = vld [vmem:[%s6304_s8 + $0xc4] ss:$8 sps:$4 sm:$0xff]   ;;  %v4971_v25 = vld [vmem:[%s6304_s8 + $0xc0] ss:$8 sps:$4 sm:$0xff]  }
 0x3dd   : > { %3668 = vmatprep.subr.bf16.mxu1 %v4946_v44 }
 0x3de   : > { %3669 = vmatpush1.bf16.msra.mxu1 %v4944_v47 }
 0x3df   : > { %4419 = vmatpush3.bf16.msra.mxu0 %v4889_v26  ;;  %3670 = vmatprep.subr.bf16.mxu1 %v4949_v48  ;;  %v4976_v26 = vld [vmem:[%s6304_s8 + $0xb4] ss:$8 sps:$4 sm:$0xff]  }
 0x3e0   : > { %3415 = vmatprep.subr.bf16.mxu0 %v4892_v16 }
 0x3e2   : > { %3097 = vmatmul.mubr.bf16.vlgmr.msra.gmra.mxu0 %v2600_v63  ;;  %3185 = vmatmul.mubr.bf16.gmra.mxu1 %v5027_v35  ;;  %v4890_v35 = vld [vmem:[%s6302_s6 + $0x70] ss:$8 sps:$4 sm:$0xff]  }
 0x3e3   : > { %3104 = vmatprep.mubr.bf16.mxu0 %v2605_v2  ;;  %3416 = vmatpush1.bf16.msra.mxu0 %v4890_v35  ;;  %v4974_v63 = vld [vmem:[%s6304_s8 + $0xb0] ss:$8 sps:$4 sm:$0xff]   ;;  %v4979_v2 = vld [vmem:[%s6304_s8 + $0xa4] ss:$8 sps:$4 sm:$0xff]  }
 0x3e4   : > { %3417 = vmatprep.subr.bf16.mxu0 %v4895_v15  ;;  %3671 = vmatpush1.bf16.msra.mxu1 %v4947_v51 }
 0x3e5   : > { %3672 = vmatprep.subr.bf16.mxu1 %v4952_v4 }
 0x3e7   : > { %3418 = vmatpush1.bf16.msra.mxu0 %v4893_v18 }
 0x3e8   : > { %3419 = vmatprep.subr.bf16.mxu0 %v4898_v19  ;;  %3673 = vmatpush1.bf16.msra.mxu1 %v4950_v5 }
 0x3e9   : > { %3674 = vmatprep.subr.bf16.mxu1 %v4955_v6 }
 0x3ea   : > { %3105 = vmatmul.mubr.bf16.gmra.mxu0 %v2604_v14  ;;  %v4977_v14 = vld [vmem:[%s6304_s8 + $0xa0] ss:$8 sps:$4 sm:$0xff]  }
 0x3eb   : > { %3112 = vmatprep.mubr.bf16.mxu0 %v2609_v22  ;;  %3420 = vmatpush1.bf16.msra.mxu0 %v4896_v23 }
 0x3ec   : > { %3421 = vmatprep.subr.bf16.mxu0 %v4901_v24  ;;  %3675 = vmatpush1.bf16.msra.mxu1 %v4953_v7 }
 0x3ed   : > { %3676 = vmatprep.subr.bf16.mxu1 %v4958_v8 }
 0x3ef   : > { %3422 = vmatpush1.bf16.msra.mxu0 %v4899_v28 }
 0x3f0   : > { %3423 = vmatprep.subr.bf16.mxu0 %v4904_v29  ;;  %3677 = vmatpush1.bf16.msra.mxu1 %v4956_v10 }
 0x3f1   : > { %3678 = vmatprep.subr.bf16.mxu1 %v4961_v50 }
 0x3f2   : > { %3113 = vmatmul.mubr.bf16.gmra.mxu0 %v2608_v27 }
 0x3f3   : > { %3120 = vmatprep.mubr.bf16.mxu0 %v2615_v60  ;;  %3424 = vmatpush1.bf16.msra.mxu0 %v4902_v30 }
 0x3f4   : > { %3425 = vmatprep.subr.bf16.mxu0 %v4907_v31  ;;  %3679 = vmatpush1.bf16.msra.mxu1 %v4959_v54 }
 0x3f5   : > { %3680 = vmatprep.subr.bf16.mxu1 %v4964_v11 }
 0x3f7   : > { %3426 = vmatpush1.bf16.msra.mxu0 %v4905_v32 }
 0x3f8   : > { %3427 = vmatprep.subr.bf16.mxu0 %v4910_v33  ;;  %3681 = vmatpush2.bf16.msra.mxu1 %v4962_v12 }
 0x3f9   : > { %3682 = vmatprep.subr.bf16.mxu1 %v4967_v13 }
 0x3fa   : > { %3121 = vmatmul.mubr.bf16.gmra.mxu0 %v2614_v0 }
 0x3fb   : > { %3428 = vmatpush1.bf16.msra.mxu0 %v4908_v34 }
 0x3fc   : > { %3429 = vmatprep.subr.bf16.mxu0 %v4913_v37  ;;  %3683 = vmatpush2.bf16.msra.mxu1 %v4965_v17 }
 0x3fd   : > { %3684 = vmatprep.subr.bf16.mxu1 %v4970_v62 }
 0x3ff   : > { %3430 = vmatpush1.bf16.msra.mxu0 %v4911_v38 }
 0x400   : > { %3431 = vmatprep.subr.bf16.mxu0 %v4916_v39  ;;  %3685 = vmatpush2.bf16.msra.mxu1 %v4968_v20 }
 0x401   : > { %3686 = vmatprep.subr.bf16.mxu1 %v4973_v21 }
 0x403   : > { %3432 = vmatpush2.bf16.msra.mxu0 %v4914_v36 }
 0x404   : > { %3433 = vmatprep.subr.bf16.mxu0 %v4919_v9  ;;  %3687 = vmatpush2.bf16.msra.mxu1 %v4971_v25 }
 0x405   : > { %3688 = vmatprep.subr.bf16.mxu1 %v4976_v26 }
 0x407   : > { %3434 = vmatpush2.bf16.msra.mxu0 %v4917_v40 }
 0x408   : > { %3435 = vmatprep.subr.bf16.mxu0 %v4922_v41  ;;  %3689 = vmatpush2.bf16.msra.mxu1 %v4974_v63 }
 0x409   : > { %3690 = vmatprep.subr.bf16.mxu1 %v4979_v2 }
 0x40b   : > { %3436 = vmatpush2.bf16.msra.mxu0 %v4920_v42 }
 0x40c   : > { %3437 = vmatprep.subr.bf16.mxu0 %v4925_v43  ;;  %3691 = vmatpush2.bf16.msra.mxu1 %v4977_v14 }
 0x40f   : > { %3438 = vmatpush2.bf16.msra.mxu0 %v4923_v45 }
 0x410   : > { %3439 = vmatprep.subr.bf16.mxu0 %v4928_v52 }
 0x413   : > { %3440 = vmatpush2.bf16.msra.mxu0 %v4926_v55 }
 0x414   : > { %3441 = vmatprep.subr.bf16.mxu0 %v4931_v53 }
 0x417   : > { %3442 = vmatpush2.bf16.msra.mxu0 %v4929_v56 }
 0x418   : > { %3443 = vmatprep.subr.bf16.mxu0 %v4934_v58 }
 0x41b   : > { %3444 = vmatpush2.bf16.msra.mxu0 %v4932_v57 }
 0x41c   : > { %3445 = vmatprep.subr.bf16.mxu0 %v4937_v59 }
 0x41f   : > { %3446 = vmatpush2.bf16.msra.mxu0 %v4935_v61 }
 0x482   : > { %v4380_v22 = vpop.f32.mrf.mxu0 }
 0x484   : > { %v4381_v27 = vpop.f32.mrf.mxu0 }
 0x485   : > { %v4382_v10 = vadd.f32 %v4381_v27, %v4380_v22 }
 0x486   : > { %v4383_v60 = vpop.f32.mrf.mxu0 }
 0x488   : > { %v4384_v0 = vpop.f32.mrf.mxu0 }
 0x489   : > { %v4385_v4 = vadd.f32 %v4384_v0, %v4383_v60 }
 0x48a   : > { %v4386_v16 = vpop.f32.mrf.mxu0  ;;  %v4460_v35 = vpop.f32.mrf.mxu1 }
 0x48c   : > { %v4387_v15 = vpop.f32.mrf.mxu0  ;;  %v4461_v18 = vpop.f32.mrf.mxu1 }
 0x48d   : > { %v4388_v5 = vadd.f32 %v4387_v15, %v4386_v16  ;;  %v4462_v14 = vadd.f32 %v4461_v18, %v4460_v35 }
 0x48e   : > { %v4389_v19 = vpop.f32.mrf.mxu0  ;;  %v4463_v23 = vpop.f32.mrf.mxu1 }
 0x490   : > { %v4390_v24 = vpop.f32.mrf.mxu0  ;;  %v4464_v28 = vpop.f32.mrf.mxu1 }
 0x491   : > { %v4391_v48 = vadd.f32 %v4390_v24, %v4389_v19  ;;  %v4465_v62 = vadd.f32 %v4464_v28, %v4463_v23 }
 0x492   : > { %v4392_v29 = vpop.f32.mrf.mxu0  ;;  %v4466_v30 = vpop.f32.mrf.mxu1 }
 0x494   : > { %v4393_v31 = vpop.f32.mrf.mxu0  ;;  %v4467_v32 = vpop.f32.mrf.mxu1 }
 0x495   : > { %v4394_v13 = vadd.f32 %v4393_v31, %v4392_v29  ;;  %v4468_v20 = vadd.f32 %v4467_v32, %v4466_v30 }
 0x496   : > { %v4395_v33 = vpop.f32.mrf.mxu0  ;;  %v4469_v34 = vpop.f32.mrf.mxu1 }
 0x498   : > { %v4396_v37 = vpop.f32.mrf.mxu0  ;;  %v4470_v38 = vpop.f32.mrf.mxu1 }
 0x499   : > { %v4471_v50 = vadd.f32 %v4470_v38, %v4469_v34  ;;  %v4397_v15 = vadd.f32 %v4396_v37, %v4395_v33 }
 0x49a   : > { %v4398_v39 = vpop.f32.mrf.mxu0  ;;  %v4472_v36 = vpop.f32.mrf.mxu1 }
 0x49c   : > { %v4399_v9 = vpop.f32.mrf.mxu0  ;;  %v4473_v40 = vpop.f32.mrf.mxu1 }
 0x49d   : > { %v4474_v63 = vadd.f32 %v4473_v40, %v4472_v36  ;;  %v4400_v32 = vadd.f32 %v4399_v9, %v4398_v39 }
 0x49e   : > { %v4401_v41 = vpop.f32.mrf.mxu0  ;;  %v4475_v42 = vpop.f32.mrf.mxu1 }
 0x4a0   : > { %v4402_v43 = vpop.f32.mrf.mxu0  ;;  %v4476_v45 = vpop.f32.mrf.mxu1 }
 0x4a1   : > { %v4477_v38 = vadd.f32 %v4476_v45, %v4475_v42 }
 0x4a2   : > { %v4420_v52 = vpop.f32.mrf.mxu0  ;;  %v4478_v55 = vpop.f32.mrf.mxu1 }
 0x4a4   : > { %v4421_v53 = vpop.f32.mrf.mxu0  ;;  %v4479_v56 = vpop.f32.mrf.mxu1 }
 0x4a5   : > { %v4422_v6 = vadd.f32 %v4421_v53, %v4420_v52  ;;  %v4480_v52 = vadd.f32 %v4479_v56, %v4478_v55  ;;  %v4982_v55 = vld [vmem:[%s6304_s8 + $0x94] ss:$8 sps:$4 sm:$0xff]   ;;  %v4980_v56 = vld [vmem:[%s6304_s8 + $0x90] ss:$8 sps:$4 sm:$0xff]  }
 0x4a6   : > { %v4423_v57 = vpop.f32.mrf.mxu0  ;;  %v4481_v58 = vpop.f32.mrf.mxu1  ;;  %3692 = vmatprep.subr.bf16.mxu1 %v4982_v55 }
 0x4a7   : > { %v3099_v21 = vadd.f32 %v4422_v6, %v4382_v10  ;;  %3693 = vmatpush2.bf16.msra.mxu1 %v4980_v56  ;;  %v4990_v6 = vld [vmem:[%s6306_s10 + $0x68] sm:$0xff]   ;;  %v4993_v10 = vld [vmem:[%s6306_s10 + $0x20] sm:$0xff]  }
 0x4a8   : > { %v4424_v59 = vpop.f32.mrf.mxu0  ;;  %v4482_v61 = vpop.f32.mrf.mxu1 }
 0x4a9   : > { %v4425_v3 = vadd.f32 %v4424_v59, %v4423_v57  ;;  %v3163_v27 = vadd.f32 %v4462_v14, %v3099_v21 }
 0x4aa   : > { %v4426_v46 = vpop.f32.mrf.mxu0 }
 0x4ab   : > { %v3102_v54 = vadd.f32 %v4425_v3, %v4385_v4  ;;  %v3192_v40 = vmax.f32 %v3163_v27, 0.0  ;;  %v4988_v4 = vld [vmem:[%s6306_s10 + $0x70] sm:$0xff]  }
 0x4ac   : > { %v4427_v49 = vpop.f32.mrf.mxu0 }
 0x4ad   : > { %v4428_v44 = vadd.f32 %v4427_v49, %v4426_v46  ;;  %v3166_v60 = vadd.f32 %v4465_v62, %v3102_v54  ;;  %v4995_v54 = vld [vmem:[%s6306_s10 + $0x18] sm:$0xff]  }
 0x4ae   : > { %v4429_v1 = vpop.f32.mrf.mxu0 }
 0x4af   : > { %v3107_v11 = vadd.f32 %v4428_v44, %v4388_v5  ;;  %v3193_v31 = vmax.f32 %v3166_v60, 0.0  ;;  %v4985_v44 = vld [vmem:[%s6304_s8 + $0x84] ss:$8 sps:$4 sm:$0xff]   ;;  %v4989_v5 = vld [vmem:[%s6306_s10 + $0x30] sm:$0xff]  }
 0x4b0   : > { %v4430_v47 = vpop.f32.mrf.mxu0  ;;  %3694 = vmatprep.subr.bf16.mxu1 %v4985_v44 }
 0x4b1   : > { %v4431_v51 = vadd.f32 %v4430_v47, %v4429_v1  ;;  %v3171_v0 = vadd.f32 %v4468_v20, %v3107_v11  ;;  %v3199_v37 = vmax.f32 %v3192_v40, %v3193_v31  ;;  %v4983_v47 = vld [vmem:[%s6304_s8 + $0x80] ss:$8 sps:$4 sm:$0xff]   ;;  %v4996_v11 = vld [vmem:[%s6306_s10 + $0x50] sm:$0xff]  }
 0x4b2   : > { %v4432_v7 = vpop.f32.mrf.mxu0  ;;  %3695 = vmatpush2.bf16.msra.mxu1 %v4983_v47  ;;  %v3243_v20 = vld [vmem:[%s6303_s7] sm:$0x3] }
 0x4b3   : > { %v3110_v8 = vadd.f32 %v4431_v51, %v4391_v48  ;;  %v3194_v23 = vmax.f32 %v3171_v0, 0.0  ;;  %v4986_v48 = vld [vmem:[%s6306_s10 + $0x78] sm:$0xff]   ;;  %v3492_v31 = vld [vmem:[%s6305_s9] sm:$0x3] }
 0x4b4   : > { %v4433_v12 = vpop.f32.mrf.mxu0  ;;  %v4987_v51 = vld [vmem:[%s6306_s10 + $0x38] sm:$0xff]   ;;  %4484 = vmatprep.subr.bf16.mxu0 %v4986_v48 }
 0x4b5   : > { %v4434_v17 = vadd.f32 %v4433_v12, %v4432_v7  ;;  %v3174_v25 = vadd.f32 %v4471_v50, %v3110_v8  ;;  %v3200_v59 = vmax.f32 %v3199_v37, %v3194_v23  ;;  %v4991_v7 = vld [vmem:[%s6306_s10 + $0x28] sm:$0xff]   ;;  %v4992_v8 = vld [vmem:[%s6306_s10 + $0x60] sm:$0xff]   ;;  %v4994_v50 = vld [vmem:[%s6306_s10 + $0x58] sm:$0xff]  }
 0x4b6   : > { %v4435_v26 = vpop.f32.mrf.mxu0  ;;  %v4997_v12 = vld [vmem:[%s6306_s10 + $0x10] sm:$0xff]  }
 0x4b7   : > { %v3115_v2 = vadd.f32 %v4434_v17, %v4394_v13  ;;  %v3195_v24 = vmax.f32 %v3174_v25, 0.0  ;;  %v3245_v13 = vlaneseq }
 0x4b8   : > { %v4436_v16 = vpop.f32.mrf.mxu0 }
 0x4b9   : > { %v3179_v19 = vadd.f32 %v4474_v63, %v3115_v2  ;;  %v4437_v22 = vadd.f32 %v4436_v16, %v4435_v26  ;;  %v3201_v35 = vmax.f32 %v3194_v23, %v3195_v24  ;;  %v3246_v17 = vshrl.u32 %v3245_v13, 7  ;;  %v4998_v24 = vld [vmem:[%s6306_s10 + $0x48] sm:$0xff]  }
 0x4ba   : > { %v4438_v34 = vpop.f32.mrf.mxu0 }
 0x4bb   : > { %v3118_v29 = vadd.f32 %v4437_v22, %v4397_v15  ;;  %v3196_v28 = vmax.f32 %v3179_v19, 0.0  ;;  %v3247_v62 = vsub.s32 0, %v3246_v17  ;;  %v3251_v21 = vsub.s32 1, %v3246_v17 }
 0x4bc   : > { %v4439_v30 = vpop.f32.mrf.mxu0 }
 0x4bd   : > { %v3182_v41 = vadd.f32 %v4477_v38, %v3118_v29  ;;  %v4440_v36 = vadd.f32 %v4439_v30, %v4438_v34  ;;  %v3202_v57 = vmax.f32 %v3201_v35, %v3196_v28  ;;  %v3248_v25 = vrot.slane %v3243_v20, %v3247_v62  ;;  %v4999_v34 = vld [vmem:[%s6306_s10 + $0x8] sm:$0xff]   ;;  %v5000_v38 = vld [vmem:[%s6306_s10 + $0x40] sm:$0xff]  }
 0x4be   : > { %v4441_v18 = vpop.f32.mrf.mxu0  ;;  %v3252_v26 = vrot.slane %v3243_v20, %v3251_v21  ;;  %v5001_v29 = vld [vmem:[%s6306_s10] sm:$0xff]   ;;  %v3497_v23 = vrot.slane %v3492_v31, %v3247_v62 }
 0x4bf   : > { %v3197_v43 = vmax.f32 %v3182_v41, 0.0  ;;  %v3123_v33 = vadd.f32 %v4440_v36, %v4400_v32  ;;  %v3205_v61 = vadd.f32 %v3202_v57, %v3200_v59 }
 0x4c0   : > { %v4442_v53 = vpop.f32.mrf.mxu0 }
 0x4c1   : > { %v3187_v58 = vadd.f32 %v4480_v52, %v3123_v33  ;;  %v3203_v42 = vmax.f32 %v3196_v28, %v3197_v43  ;;  %v3206_v1 = vmul.f32 0.5, %v3205_v61  ;;  %v3501_v28 = vrot.slane %v3492_v31, %v3251_v21  ;;  %v4248_v53 = vld [vmem:[%s6307_s11] ss:$0 sm:$0xff] }
 0x4c3   : > { %v3198_v45 = vmax.f32 %v3187_v58, 0.0  ;;  %v3209_v3 = vpack.c.bf16 %v3206_v1, %v3206_v1 }
 0x4c5   : > { %v3204_v46 = vmax.f32 %v3203_v42, %v3198_v45 }
 0x4c7   : > { %v3207_v49 = vadd.f32 %v3204_v46, %v3202_v57 }
 0x4c9   : > { %v3208_v39 = vmul.f32 0.5, %v3207_v49 }
 0x4cb   : > { %v3210_v9 = vpack.c.bf16 %v3208_v39, %v3208_v39 }
 0x4cd   : > { %3447 = vmatprep.mubr.bf16.mxu0 %v3210_v9 }
 0x4ce   : > { %3448 = vmatmul.mubr.bf16.vlgmr.msra.gmra.mxu0 %v3209_v3 }
 0x4cf   : > { %4485 = vmatpush3.bf16.msra.mxu0 %v4987_v51 }
 0x4d0   : > { %4486 = vmatprep.subr.bf16.mxu0 %v4988_v4 }
 0x4d3   : > { %4487 = vmatpush3.bf16.msra.mxu0 %v4989_v5 }
 0x4d4   : > { %4488 = vmatprep.subr.bf16.mxu0 %v4990_v6 }
 0x4d7   : > { %4489 = vmatpush3.bf16.msra.mxu0 %v4991_v7 }
 0x4d8   : > { %4490 = vmatprep.subr.bf16.mxu0 %v4992_v8 }
 0x4db   : > { %4491 = vmatpush3.bf16.msra.mxu0 %v4993_v10 }
 0x4dc   : > { %4492 = vmatprep.subr.bf16.mxu0 %v4994_v50 }
 0x4df   : > { %4493 = vmatpush3.bf16.msra.mxu0 %v4995_v54 }
 0x4e0   : > { %4494 = vmatprep.subr.bf16.mxu0 %v4996_v11 }
 0x4e3   : > { %4495 = vmatpush3.bf16.msra.mxu0 %v4997_v12 }
 0x4e4   : > { %4496 = vmatprep.subr.bf16.mxu0 %v4998_v24 }
 0x4e7   : > { %4497 = vmatpush3.bf16.msra.mxu0 %v4999_v34 }
 0x4e8   : > { %4498 = vmatprep.subr.bf16.mxu0 %v5000_v38 }
 0x4eb   : > { %4499 = vmatpush3.bf16.msra.mxu0 %v5001_v29 }
 0x58e   : > { %v3449_v63 = vpop.f32.mrf.mxu0 }
 0x58f   : > { %v3450_v2 = vadd.f32 %v3449_v63, %v3248_v25 }
 0x590   : > { %v3451_v14 = vpop.f32.mrf.mxu0 }
 0x591   : > { %v3452_v60 = vadd.f32 %v3451_v14, %v3252_v26  ;;  %v3456_v0 = vmax.f32 %v3450_v2, 0.0 }
 0x592   : > { %v3453_v16 = vpop.f32.mrf.mxu0 }
 0x593   : > { %v3457_v15 = vmax.f32 %v3452_v60, 0.0  ;;  %v3458_v27 = vpack.c.bf16 %v3456_v0, %v3456_v0 }
 0x594   : > { %v3454_v19 = vpop.f32.mrf.mxu0 }
 0x595   : > { %v3459_v22 = vpack.c.bf16 %v3457_v15, %v3457_v15 }
 0x597   : > { %3696 = vmatprep.mubr.bf16.mxu1 %v3459_v22 }
 0x598   : > { %3697 = vmatmul.mubr.bf16.vlgmr.msra.gmra.mxu1 %v3458_v27 }
 0x658   : > { %v3698_v30 = vpop.f32.mrf.mxu1 }
 0x659   : > { %v3699_v32 = vadd.f32 %v3698_v30, %v3497_v23 }
 0x65a   : > { %v3700_v41 = vpop.f32.mrf.mxu1 }
 0x65b   : > { %v3701_v36 = vadd.f32 %v3700_v41, %v3501_v28  ;;  %v3705_v40 = vmax.f32 %v3699_v32, 0.0 }
 0x65c   : > { %v3702_v35 = vpop.f32.mrf.mxu1 }
 0x65d   : > { %v3706_v18 = vmax.f32 %v3701_v36, 0.0  ;;  %v3707_v33 = vpack.c.bf16 %v3705_v40, %v3705_v40 }
 0x65e   : > { %v3703_v43 = vpop.f32.mrf.mxu1 }
 0x65f   : > { %v3708_v52 = vpack.c.bf16 %v3706_v18, %v3706_v18 }
 0x661   : > { %3876 = vmatprep.mubr.bf16.mxu0 %v3708_v52 }
 0x662   : > { %3877 = vmatmul.mubr.bf16.vlgmr.msra.gmra.mxu0 %v3707_v33 }
 0x722   : > { %v4500_v37 = vpop.f32.mrf.mxu0 }
 0x724   : > { %v4501_v57 = vpop.f32.mrf.mxu0 }
 0x725   : > { %v4502_v58 = vadd.f32 %v4501_v57, %v4500_v37 }
 0x726   : > { %v4503_v59 = vpop.f32.mrf.mxu0 }
 0x727   : > { %v3879_v42 = vadd.f32 %v4502_v58, %v4248_v53 }
 0x728   : > { %v4504_v45 = vpop.f32.mrf.mxu0 }
 0x729   : > { %3884 = vst [vmem:[%s566_s15] sm:$0xff] %v3879_v42 }
 0x72a PF: > { %p19_p9 = scmp.ge.s32.totalorder %s5111_s25, 4   ;;  %s6309_s21 = smov %s5020_s22 }
 0x72b   : > { %s6310_s22 = smov %s5120_s28  ;;  %s6311_s23 = smov %s5111_s25 }
 0x72c   :  { %21 = sbr.rel (!%p19_p9) target bundleno = 2 (0x2), region = 141 }

</bundles_post_ra>
